<compile_context>
chip_gen: v5e
topology: v5e:2x2
jax: 0.10.0
libtpu: 0.0.40
codegen_flags: <defaults>
</compile_context>

<pallas_src>
import functools

import jax
import jax.numpy as jnp
from jax.experimental import pallas as pl
from jax.experimental.pallas import tpu as pltpu


# --------------------------------------------------------------------------
# Fused DownBlock kernel (one batch element per grid step, everything in VMEM)
# --------------------------------------------------------------------------
def _down_block_kernel(xs_ref, w1_ref, ba1_ref, w2_ref, ba2_ref, w3_ref, ba3_ref,
                       o_ref, acol_ref, lrp_ref, rpd_ref,
                       *, t, s, cin, co, ih, iw, pad_dec, pad_c3):
    m = ih * iw
    c_s2d = s * s * cin          # conv1 input channels after space-to-depth
    c_res = s * s * co           # phase-packed hr / residue channels

    def gather_taps(img_ref, c):
        """Assemble the (m, t*t*c) im2col operand of a stride-1 t x t conv in
        the VMEM scratch and return it as a single bf16 MXU operand."""
        for kh in range(t):
            for kw in range(t):
                piece = img_ref[kh:kh + ih, kw:kw + iw, :].reshape(m, c)
                f0 = (kh * t + kw) * c
                acol_ref[:, f0:f0 + c] = piece
        return acol_ref[:, 0:t * t * c].astype(jnp.bfloat16)

    def bias_prelu(y, ba_ref):
        y = y + ba_ref[0:1, :]                 # per-column bias (f32)
        a = ba_ref[1:2, :]                     # per-column PReLU slope (f32)
        return jnp.where(y > 0.0, y, a * y)

    # ---- stage 1: conv1 (strided, via space-to-depth) + local_weight1 packed
    a1 = gather_taps(xs_ref, c_s2d)                              # (m, t*t*c_s2d)
    y1 = bias_prelu(jnp.dot(a1, w1_ref[...],
                            preferred_element_type=jnp.float32), ba1_ref)
    lr = y1[:, :co]                    # PReLU(conv1(x))                (m, co)
    lw1p = y1[:, co:]                  # PReLU(local_weight1(x)), phase-packed

    # ---- stage 2: conv2 (transposed conv, sub-pixel phases) + local_weight2
    lrp_ref[...] = jnp.zeros(lrp_ref.shape, lrp_ref.dtype)
    lrp_ref[pad_dec:pad_dec + ih, pad_dec:pad_dec + iw, :] = lr.reshape(ih, iw, co)
    a2 = gather_taps(lrp_ref, co)                                # (m, t*t*co)
    y2 = bias_prelu(jnp.dot(a2, w2_ref[...],
                            preferred_element_type=jnp.float32), ba2_ref)
    hrp = y2[:, :c_res]                # PReLU(deconv(lr)), phase-packed
    lrw = y2[:, c_res:]                # PReLU(local_weight2(lr))       (m, co)

    # ---- stage 3: fused residue -> conv3 (phase layout) -> fused final add
    resp = lw1p - hrp                  # residue = local_weight1(x) - hr
    rpd_ref[...] = jnp.zeros(rpd_ref.shape, rpd_ref.dtype)
    rpd_ref[pad_c3:pad_c3 + ih, pad_c3:pad_c3 + iw, :] = resp.reshape(ih, iw, c_res)
    a3 = gather_taps(rpd_ref, c_res)                             # (m, t*t*c_res)
    y3 = bias_prelu(jnp.dot(a3, w3_ref[...],
                            preferred_element_type=jnp.float32), ba3_ref)
    o_ref[...] = (lrw + y3).astype(o_ref.dtype)                  # lr_weight + l_residue


# --------------------------------------------------------------------------
# Glue: input layout + weight packing (pure weight-side reshapes, jit-folded)
# --------------------------------------------------------------------------
def _space_to_depth(x, s):
    n, h, w, c = x.shape
    x = x.reshape(n, h // s, s, w // s, s, c)
    x = jnp.transpose(x, (0, 1, 3, 2, 4, 5))            # (n, I, J, di, dj, c)
    return x.reshape(n, h // s, w // s, s * s * c)


def _conv_weight_s2d(w_oikk, s):
    """(Cout, Cin, K, K) stride-s weight -> (K/s, K/s, s*s*Cin, Cout) matching
    the space-to-depth channel order (di, dj, c)."""
    cout, cin, k, _ = w_oikk.shape
    t = k // s
    w = jnp.transpose(w_oikk, (2, 3, 1, 0))             # (K, K, Cin, Cout)
    w = w.reshape(t, s, t, s, cin, cout)
    w = jnp.transpose(w, (0, 2, 1, 3, 4, 5))            # (kh, kw, di, dj, c, co)
    return w.reshape(t, t, s * s * cin, cout)


def _pack_stage1(conv1, lw1, s, t, cin, co, p_s):
    """[conv1 | phase-packed local_weight1] weights / bias / PReLU slope."""
    c_s2d = s * s * cin
    w_conv = _conv_weight_s2d(conv1["w"], s).reshape(t * t * c_s2d, co)
    w_loc = jnp.zeros((t * t * c_s2d, s * s * co), jnp.float32)
    w1x1 = jnp.transpose(lw1["w"].reshape(co, cin))          # (cin, co)
    base = (p_s * t + p_s) * c_s2d                           # center tap rows
    for ph in range(s * s):
        r0 = base + ph * cin
        c0 = ph * co
        w_loc = w_loc.at[r0:r0 + cin, c0:c0 + co].set(w1x1)
    w = jnp.concatenate([w_conv, w_loc], axis=1).astype(jnp.bfloat16)
    b = jnp.concatenate([conv1["b"], jnp.tile(lw1["b"], s * s)])
    a = jnp.concatenate([jnp.full((co,), conv1["alpha"][0]),
                         jnp.full((s * s * co,), lw1["alpha"][0])])
    return w, jnp.stack([b, a]).astype(jnp.float32)


def _pack_stage2(conv2, lw2, s, t, co, pad_dec):
    """[4 deconv sub-pixel phases | local_weight2] weights / bias / slope."""
    w2 = conv2["w"]                                      # (Cin, Cout, K, K)
    w2t = jnp.transpose(w2, (2, 3, 0, 1))                # (K, K, ci, cot)
    w2t = w2t.reshape(t, s, t, s, co, co)                # [a, py, b, px, ci, cot]
    w2t = jnp.flip(w2t, axis=(0, 2))                     # a -> t-1-kh, b -> t-1-kw
    w2t = jnp.transpose(w2t, (0, 2, 4, 1, 3, 5))         # (kh, kw, ci, py, px, cot)
    w_dec = w2t.reshape(t * t * co, s * s * co)
    w_loc = jnp.zeros((t * t * co, co), jnp.float32)
    r0 = (pad_dec * t + pad_dec) * co                    # center tap rows = lr
    w_loc = w_loc.at[r0:r0 + co, :].set(jnp.transpose(lw2["w"].reshape(co, co)))
    w = jnp.concatenate([w_dec, w_loc], axis=1).astype(jnp.bfloat16)
    b = jnp.concatenate([jnp.tile(conv2["b"], s * s), lw2["b"]])
    a = jnp.concatenate([jnp.full((s * s * co,), conv2["alpha"][0]),
                         jnp.full((co,), lw2["alpha"][0])])
    return w, jnp.stack([b, a]).astype(jnp.float32)


def _pack_stage3(conv3, s, t, co):
    w = _conv_weight_s2d(conv3["w"], s).reshape(t * t * s * s * co, co)
    a = jnp.full((co,), conv3["alpha"][0])
    return w.astype(jnp.bfloat16), jnp.stack([conv3["b"], a]).astype(jnp.float32)


def _vmem_limit_bytes():
    # 32 MiB is safe everywhere (v7x scoped default); raise it on 128-MiB VMEM
    # parts (v5e / v6e) so larger variants of this kernel get headroom.
    limit = 32 * 1024 * 1024
    try:
        if pltpu.get_tpu_info().vmem_capacity_bytes >= 128 * 1024 * 1024:
            limit = 96 * 1024 * 1024
    except Exception:
        pass
    return limit


# --------------------------------------------------------------------------
# DownBlock forward (NCHW in / NCHW out, matching the PyTorch module)
# --------------------------------------------------------------------------
def down_block_forward(x_nchw, params, ksize, stride, padding):
    n, cin, H, W = x_nchw.shape
    co = params["conv1"]["w"].shape[0]
    k, s, p = ksize, stride, padding
    # TODO(synk): fall back to a generic (unpacked, per-phase) path for configs
    # that violate the standard DBPN relation below.
    assert k % s == 0 and p % s == 0 and k == 2 * p + s, (k, s, p)
    assert (H + 2 * p) % s == 0 and (W + 2 * p) % s == 0

    t = k // s
    ih = (H + 2 * p - k) // s + 1
    iw = (W + 2 * p - k) // s + 1
    pad_dec = t - 1 - p // s           # low-res padding for the deconv phases
    pad_c3 = p // s                    # low-res padding for conv3 (phase layout)

    # --- tiny XLA glue on the real-sized input: pad + space-to-depth ---
    x = jnp.transpose(x_nchw, (0, 2, 3, 1))                         # NCHW -> NHWC
    xp = jnp.pad(x, ((0, 0), (p, p), (p, p), (0, 0)))
    xs = _space_to_depth(xp, s)               # (n, ih+t-1, iw+t-1, s*s*cin)

    # --- packed weights / bias / PReLU slopes (weight-side only) ---
    w1, ba1 = _pack_stage1(params["conv1"], params["local_weight1"], s, t, cin, co, p // s)
    w2, ba2 = _pack_stage2(params["conv2"], params["local_weight2"], s, t, co, pad_dec)
    w3, ba3 = _pack_stage3(params["conv3"], s, t, co)

    k_max = max(t * t * s * s * cin, t * t * co, t * t * s * s * co)
    kernel = functools.partial(_down_block_kernel, t=t, s=s, cin=cin, co=co,
                               ih=ih, iw=iw, pad_dec=pad_dec, pad_c3=pad_c3)

    out = pl.pallas_call(
        kernel,
        grid_spec=pltpu.PrefetchScalarGridSpec(
            num_scalar_prefetch=0,
            grid=(n,),
            in_specs=[
                pl.BlockSpec((None,) + tuple(xs.shape[1:]),
                             lambda i: (i, 0, 0, 0)),
                # Weights / bias / slopes: constant index maps -> VMEM-resident.
                pl.BlockSpec(tuple(w1.shape), lambda i: (0, 0)),
                pl.BlockSpec(tuple(ba1.shape), lambda i: (0, 0)),
                pl.BlockSpec(tuple(w2.shape), lambda i: (0, 0)),
                pl.BlockSpec(tuple(ba2.shape), lambda i: (0, 0)),
                pl.BlockSpec(tuple(w3.shape), lambda i: (0, 0)),
                pl.BlockSpec(tuple(ba3.shape), lambda i: (0, 0)),
            ],
            out_specs=pl.BlockSpec((None, ih * iw, co), lambda i: (i, 0, 0)),
            scratch_shapes=[
                pltpu.VMEM((ih * iw, k_max), jnp.float32),               # im2col
                pltpu.VMEM((ih + 2 * pad_dec, iw + 2 * pad_dec, co),
                           jnp.float32),                                 # padded lr
                pltpu.VMEM((ih + 2 * pad_c3, iw + 2 * pad_c3, s * s * co),
                           jnp.float32),                                 # padded residue
            ],
        ),
        out_shape=jax.ShapeDtypeStruct((n, ih * iw, co), jnp.float32),
        compiler_params=pltpu.CompilerParams(
            dimension_semantics=("parallel",),
            vmem_limit_bytes=_vmem_limit_bytes(),
        ),
    )(xs, w1, ba1, w2, ba2, w3, ba3)

    out = out.reshape(n, ih, iw, co)
    return jnp.transpose(out, (0, 3, 1, 2))                         # NHWC -> NCHW


# --------------------------------------------------------------------------
# Pure-JAX f32 reference (for correctness checking)
# --------------------------------------------------------------------------
def _conv_ref(x, prm, stride, pad):
    y = jax.lax.conv_general_dilated(
        x, prm["w"], (stride, stride), ((pad, pad), (pad, pad)),
        dimension_numbers=("NCHW", "OIHW", "NCHW"),
        precision=jax.lax.Precision.HIGHEST)
    y = y + prm["b"][None, :, None, None]
    return jnp.where(y > 0, y, prm["alpha"][0] * y)


def _deconv_ref(x, prm, k, stride, pad):
    wt = jnp.transpose(jnp.flip(prm["w"], (2, 3)), (1, 0, 2, 3))
    q = k - 1 - pad
    y = jax.lax.conv_general_dilated(
        x, wt, (1, 1), ((q, q), (q, q)), lhs_dilation=(stride, stride),
        dimension_numbers=("NCHW", "OIHW", "NCHW"),
        precision=jax.lax.Precision.HIGHEST)
    y = y + prm["b"][None, :, None, None]
    return jnp.where(y > 0, y, prm["alpha"][0] * y)


def _ref_forward(x, params, k, s, p):
    lr = _conv_ref(x, params["conv1"], s, p)
    hr = _deconv_ref(lr, params["conv2"], k, s, p)
    residue = _conv_ref(x, params["local_weight1"], 1, 0) - hr
    l_res = _conv_ref(residue, params["conv3"], s, p)
    lr_weight = _conv_ref(lr, params["local_weight2"], 1, 0)
    return lr_weight + l_res


# --------------------------------------------------------------------------
# Deterministic parameter init (mimics PyTorch fan_in uniform bounds)
# --------------------------------------------------------------------------
def _init_conv(key, cout, cin, k):
    kw_key, b_key = jax.random.split(key)
    bound = 1.0 / jnp.sqrt(cin * k * k)
    w = jax.random.uniform(kw_key, (cout, cin, k, k), jnp.float32, -bound, bound)
    b = jax.random.uniform(b_key, (cout,), jnp.float32, -bound, bound)
    return {"w": w, "b": b, "alpha": jnp.array([0.25], jnp.float32)}


def _init_deconv(key, cin, cout, k):
    kw_key, b_key = jax.random.split(key)
    bound = 1.0 / jnp.sqrt(cout * k * k)
    w = jax.random.uniform(kw_key, (cin, cout, k, k), jnp.float32, -bound, bound)
    b = jax.random.uniform(b_key, (cout,), jnp.float32, -bound, bound)
    return {"w": w, "b": b, "alpha": jnp.array([0.25], jnp.float32)}


def init_down_block(key, input_size, output_size, ksize):
    k1, k2, k3, k4, k5 = jax.random.split(key, 5)
    return {
        "conv1": _init_conv(k1, output_size, input_size, ksize),
        "conv2": _init_deconv(k2, output_size, output_size, ksize),
        "conv3": _init_conv(k3, output_size, output_size, ksize),
        "local_weight1": _init_conv(k4, output_size, input_size, 1),
        "local_weight2": _init_conv(k5, output_size, output_size, 1),
    }


# --------------------------------------------------------------------------
if __name__ == "__main__":
    # batch=2, input_size=4, output_size=8, spatial=16x16
    # kernel_size=6, stride=2, padding=2  (16 -> 8 back-projection)
    batch, input_size, output_size = 2, 4, 8
    H = W = 16
    ksize, stride, padding = 6, 2, 2

    key = jax.random.PRNGKey(0)
    x_key, p_key = jax.random.split(key)
    x = jax.random.normal(x_key, (batch, input_size, H, W), jnp.float32)  # NCHW
    params = init_down_block(p_key, input_size, output_size, ksize)

    fwd = jax.jit(functools.partial(down_block_forward, ksize=ksize,
                                    stride=stride, padding=padding))
    out = jax.block_until_ready(fwd(x, params))

    expected_hw = (H + 2 * padding - ksize) // stride + 1
    assert out.shape == (batch, output_size, expected_hw, expected_hw), out.shape
    assert bool(jnp.all(jnp.isfinite(out)))

    ref = jax.jit(functools.partial(_ref_forward, k=ksize, s=stride,
                                    p=padding))(x, params)
    err = float(jnp.max(jnp.abs(out - ref)))
    assert err < 5e-2, f"max abs error vs f32 reference: {err}"
    print("KERNEL_OK")
</pallas_src>

<mosaic_0001>
module attributes {stable_mosaic.version = 11 : i64} {
  func.func @_down_block_kernel(%arg0: i32, %arg1: memref<1x10x10x16xf32, #tpu.memory_space<vmem>>, %arg2: memref<144x40xbf16, #tpu.memory_space<vmem>>, %arg3: memref<2x40xf32, #tpu.memory_space<vmem>>, %arg4: memref<72x40xbf16, #tpu.memory_space<vmem>>, %arg5: memref<2x40xf32, #tpu.memory_space<vmem>>, %arg6: memref<288x8xbf16, #tpu.memory_space<vmem>>, %arg7: memref<2x8xf32, #tpu.memory_space<vmem>>, %arg8: memref<1x64x8xf32, #tpu.memory_space<vmem>>, %arg9: memref<64x288xf32, #tpu.memory_space<vmem>>, %arg10: memref<10x10x8xf32, #tpu.memory_space<vmem>>, %arg11: memref<10x10x32xf32, #tpu.memory_space<vmem>>) attributes {dimension_semantics = [#tpu.dimension_semantics<parallel>], iteration_bounds = array<i64: 2>, scalar_prefetch = 0 : i64, scratch_operands = 3 : i64, tpu.core_type = #tpu.core_type<tc>, window_params = [{transform_indices = @transform_0, window_bounds = array<i64: 1, 10, 10, 16>}, {pipeline_mode = #tpu.pipeline_mode<synchronous>, transform_indices = @transform_1, window_bounds = array<i64: 144, 40>}, {pipeline_mode = #tpu.pipeline_mode<synchronous>, transform_indices = @transform_2, window_bounds = array<i64: 2, 40>}, {pipeline_mode = #tpu.pipeline_mode<synchronous>, transform_indices = @transform_3, window_bounds = array<i64: 72, 40>}, {pipeline_mode = #tpu.pipeline_mode<synchronous>, transform_indices = @transform_4, window_bounds = array<i64: 2, 40>}, {pipeline_mode = #tpu.pipeline_mode<synchronous>, transform_indices = @transform_5, window_bounds = array<i64: 288, 8>}, {pipeline_mode = #tpu.pipeline_mode<synchronous>, transform_indices = @transform_6, window_bounds = array<i64: 2, 8>}, {transform_indices = @transform_7, window_bounds = array<i64: 1, 64, 8>}]} {
    %c0 = arith.constant 0 : index
    %c0_0 = arith.constant 0 : index
    %c0_1 = arith.constant 0 : index
    %c0_2 = arith.constant 0 : index
    %0 = vector.load %arg1[%c0, %c0_0, %c0_1, %c0_2] : memref<1x10x10x16xf32, #tpu.memory_space<vmem>>, vector<1x8x8x16xf32>
    %1 = vector.shape_cast %0 : vector<1x8x8x16xf32> to vector<8x8x16xf32>
    %2 = vector.shape_cast %1 : vector<8x8x16xf32> to vector<64x16xf32>
    %c0_3 = arith.constant 0 : index
    %c0_4 = arith.constant 0 : index
    %3 = vector.load %arg9[%c0_3, %c0_4] : memref<64x288xf32, #tpu.memory_space<vmem>>, vector<64x16xf32>
    tpu.vector_store %arg9[%c0_3, %c0_4], %2 {strides = array<i32>} : memref<64x288xf32, #tpu.memory_space<vmem>>, vector<64x16xf32>,
    %c0_5 = arith.constant 0 : index
    %c0_6 = arith.constant 0 : index
    %c1 = arith.constant 1 : index
    %c0_7 = arith.constant 0 : index
    %4 = vector.load %arg1[%c0_5, %c0_6, %c1, %c0_7] : memref<1x10x10x16xf32, #tpu.memory_space<vmem>>, vector<1x8x8x16xf32>
    %5 = vector.shape_cast %4 : vector<1x8x8x16xf32> to vector<8x8x16xf32>
    %6 = vector.shape_cast %5 : vector<8x8x16xf32> to vector<64x16xf32>
    %c0_8 = arith.constant 0 : index
    %c16 = arith.constant 16 : index
    %7 = vector.load %arg9[%c0_8, %c16] : memref<64x288xf32, #tpu.memory_space<vmem>>, vector<64x16xf32>
    tpu.vector_store %arg9[%c0_8, %c16], %6 {strides = array<i32>} : memref<64x288xf32, #tpu.memory_space<vmem>>, vector<64x16xf32>,
    %c0_9 = arith.constant 0 : index
    %c0_10 = arith.constant 0 : index
    %c2 = arith.constant 2 : index
    %c0_11 = arith.constant 0 : index
    %8 = vector.load %arg1[%c0_9, %c0_10, %c2, %c0_11] : memref<1x10x10x16xf32, #tpu.memory_space<vmem>>, vector<1x8x8x16xf32>
    %9 = vector.shape_cast %8 : vector<1x8x8x16xf32> to vector<8x8x16xf32>
    %10 = vector.shape_cast %9 : vector<8x8x16xf32> to vector<64x16xf32>
    %c0_12 = arith.constant 0 : index
    %c32 = arith.constant 32 : index
    %11 = vector.load %arg9[%c0_12, %c32] : memref<64x288xf32, #tpu.memory_space<vmem>>, vector<64x16xf32>
    tpu.vector_store %arg9[%c0_12, %c32], %10 {strides = array<i32>} : memref<64x288xf32, #tpu.memory_space<vmem>>, vector<64x16xf32>,
    %c0_13 = arith.constant 0 : index
    %c1_14 = arith.constant 1 : index
    %c0_15 = arith.constant 0 : index
    %c0_16 = arith.constant 0 : index
    %12 = vector.load %arg1[%c0_13, %c1_14, %c0_15, %c0_16] : memref<1x10x10x16xf32, #tpu.memory_space<vmem>>, vector<1x8x8x16xf32>
    %13 = vector.shape_cast %12 : vector<1x8x8x16xf32> to vector<8x8x16xf32>
    %14 = vector.shape_cast %13 : vector<8x8x16xf32> to vector<64x16xf32>
    %c0_17 = arith.constant 0 : index
    %c48 = arith.constant 48 : index
    %15 = vector.load %arg9[%c0_17, %c48] : memref<64x288xf32, #tpu.memory_space<vmem>>, vector<64x16xf32>
    tpu.vector_store %arg9[%c0_17, %c48], %14 {strides = array<i32>} : memref<64x288xf32, #tpu.memory_space<vmem>>, vector<64x16xf32>,
    %c0_18 = arith.constant 0 : index
    %c1_19 = arith.constant 1 : index
    %c1_20 = arith.constant 1 : index
    %c0_21 = arith.constant 0 : index
    %16 = vector.load %arg1[%c0_18, %c1_19, %c1_20, %c0_21] : memref<1x10x10x16xf32, #tpu.memory_space<vmem>>, vector<1x8x8x16xf32>
    %17 = vector.shape_cast %16 : vector<1x8x8x16xf32> to vector<8x8x16xf32>
    %18 = vector.shape_cast %17 : vector<8x8x16xf32> to vector<64x16xf32>
    %c0_22 = arith.constant 0 : index
    %c64 = arith.constant 64 : index
    %19 = vector.load %arg9[%c0_22, %c64] : memref<64x288xf32, #tpu.memory_space<vmem>>, vector<64x16xf32>
    tpu.vector_store %arg9[%c0_22, %c64], %18 {strides = array<i32>} : memref<64x288xf32, #tpu.memory_space<vmem>>, vector<64x16xf32>,
    %c0_23 = arith.constant 0 : index
    %c1_24 = arith.constant 1 : index
    %c2_25 = arith.constant 2 : index
    %c0_26 = arith.constant 0 : index
    %20 = vector.load %arg1[%c0_23, %c1_24, %c2_25, %c0_26] : memref<1x10x10x16xf32, #tpu.memory_space<vmem>>, vector<1x8x8x16xf32>
    %21 = vector.shape_cast %20 : vector<1x8x8x16xf32> to vector<8x8x16xf32>
    %22 = vector.shape_cast %21 : vector<8x8x16xf32> to vector<64x16xf32>
    %c0_27 = arith.constant 0 : index
    %c80 = arith.constant 80 : index
    %23 = vector.load %arg9[%c0_27, %c80] : memref<64x288xf32, #tpu.memory_space<vmem>>, vector<64x16xf32>
    tpu.vector_store %arg9[%c0_27, %c80], %22 {strides = array<i32>} : memref<64x288xf32, #tpu.memory_space<vmem>>, vector<64x16xf32>,
    %c0_28 = arith.constant 0 : index
    %c2_29 = arith.constant 2 : index
    %c0_30 = arith.constant 0 : index
    %c0_31 = arith.constant 0 : index
    %24 = vector.load %arg1[%c0_28, %c2_29, %c0_30, %c0_31] : memref<1x10x10x16xf32, #tpu.memory_space<vmem>>, vector<1x8x8x16xf32>
    %25 = vector.shape_cast %24 : vector<1x8x8x16xf32> to vector<8x8x16xf32>
    %26 = vector.shape_cast %25 : vector<8x8x16xf32> to vector<64x16xf32>
    %c0_32 = arith.constant 0 : index
    %c96 = arith.constant 96 : index
    %27 = vector.load %arg9[%c0_32, %c96] : memref<64x288xf32, #tpu.memory_space<vmem>>, vector<64x16xf32>
    tpu.vector_store %arg9[%c0_32, %c96], %26 {strides = array<i32>} : memref<64x288xf32, #tpu.memory_space<vmem>>, vector<64x16xf32>,
    %c0_33 = arith.constant 0 : index
    %c2_34 = arith.constant 2 : index
    %c1_35 = arith.constant 1 : index
    %c0_36 = arith.constant 0 : index
    %28 = vector.load %arg1[%c0_33, %c2_34, %c1_35, %c0_36] : memref<1x10x10x16xf32, #tpu.memory_space<vmem>>, vector<1x8x8x16xf32>
    %29 = vector.shape_cast %28 : vector<1x8x8x16xf32> to vector<8x8x16xf32>
    %30 = vector.shape_cast %29 : vector<8x8x16xf32> to vector<64x16xf32>
    %c0_37 = arith.constant 0 : index
    %c112 = arith.constant 112 : index
    %31 = vector.load %arg9[%c0_37, %c112] : memref<64x288xf32, #tpu.memory_space<vmem>>, vector<64x16xf32>
    tpu.vector_store %arg9[%c0_37, %c112], %30 {strides = array<i32>} : memref<64x288xf32, #tpu.memory_space<vmem>>, vector<64x16xf32>,
    %c0_38 = arith.constant 0 : index
    %c2_39 = arith.constant 2 : index
    %c2_40 = arith.constant 2 : index
    %c0_41 = arith.constant 0 : index
    %32 = vector.load %arg1[%c0_38, %c2_39, %c2_40, %c0_41] : memref<1x10x10x16xf32, #tpu.memory_space<vmem>>, vector<1x8x8x16xf32>
    %33 = vector.shape_cast %32 : vector<1x8x8x16xf32> to vector<8x8x16xf32>
    %34 = vector.shape_cast %33 : vector<8x8x16xf32> to vector<64x16xf32>
    %c0_42 = arith.constant 0 : index
    %c128 = arith.constant 128 : index
    %35 = vector.load %arg9[%c0_42, %c128] : memref<64x288xf32, #tpu.memory_space<vmem>>, vector<64x16xf32>
    tpu.vector_store %arg9[%c0_42, %c128], %34 {strides = array<i32>} : memref<64x288xf32, #tpu.memory_space<vmem>>, vector<64x16xf32>,
    %c0_43 = arith.constant 0 : index
    %c0_44 = arith.constant 0 : index
    %36 = vector.load %arg9[%c0_43, %c0_44] : memref<64x288xf32, #tpu.memory_space<vmem>>, vector<64x144xf32>
    %37 = arith.truncf %36 : vector<64x144xf32> to vector<64x144xbf16>
    %c0_45 = arith.constant 0 : index
    %c0_46 = arith.constant 0 : index
    %38 = vector.load %arg2[%c0_45, %c0_46] : memref<144x40xbf16, #tpu.memory_space<vmem>>, vector<144x40xbf16>
    %cst = arith.constant dense<0.000000e+00> : vector<64x40xf32>
    %39 = tpu.matmul %37, %38, %cst {dimension_numbers = #tpu.dot_dimension_numbers<[1], [0], [0], [1], [0, 0, 1, 1], [], []>} : vector<64x144xbf16>, vector<144x40xbf16>, vector<64x40xf32> -> vector<64x40xf32>
    %c0_47 = arith.constant 0 : index
    %c0_48 = arith.constant 0 : index
    %40 = vector.load %arg3[%c0_47, %c0_48] : memref<2x40xf32, #tpu.memory_space<vmem>>, vector<1x40xf32>
    %41 = vector.broadcast %40 : vector<1x40xf32> to vector<64x40xf32>
    %42 = arith.addf %39, %41 : vector<64x40xf32>
    %c1_49 = arith.constant 1 : index
    %c0_50 = arith.constant 0 : index
    %43 = vector.load %arg3[%c1_49, %c0_50] : memref<2x40xf32, #tpu.memory_space<vmem>>, vector<1x40xf32>
    %cst_51 = arith.constant 0.000000e+00 : f32
    %44 = vector.broadcast %cst_51 : f32 to vector<64x40xf32>
    %45 = arith.cmpf ogt, %42, %44 : vector<64x40xf32>
    %46 = vector.broadcast %43 : vector<1x40xf32> to vector<64x40xf32>
    %47 = arith.mulf %46, %42 : vector<64x40xf32>
    %48 = arith.select %45, %42, %47 : vector<64x40xi1>, vector<64x40xf32>
    %49 = vector.extract_strided_slice %48 {offsets = [0, 0], sizes = [64, 8], strides = [1, 1]} : vector<64x40xf32> to vector<64x8xf32>
    %50 = vector.extract_strided_slice %48 {offsets = [0, 8], sizes = [64, 32], strides = [1, 1]} : vector<64x40xf32> to vector<64x32xf32>
    %cst_52 = arith.constant 0.000000e+00 : f32
    %51 = vector.broadcast %cst_52 : f32 to vector<10x10x8xf32>
    %c0_53 = arith.constant 0 : index
    %c0_54 = arith.constant 0 : index
    %c0_55 = arith.constant 0 : index
    %52 = vector.load %arg10[%c0_53, %c0_54, %c0_55] : memref<10x10x8xf32, #tpu.memory_space<vmem>>, vector<10x10x8xf32>
    tpu.vector_store %arg10[%c0_53, %c0_54, %c0_55], %51 {strides = array<i32>} : memref<10x10x8xf32, #tpu.memory_space<vmem>>, vector<10x10x8xf32>,
    %53 = vector.shape_cast %49 : vector<64x8xf32> to vector<8x8x8xf32>
    %c1_56 = arith.constant 1 : index
    %c1_57 = arith.constant 1 : index
    %c0_58 = arith.constant 0 : index
    %54 = vector.load %arg10[%c1_56, %c1_57, %c0_58] : memref<10x10x8xf32, #tpu.memory_space<vmem>>, vector<8x8x8xf32>
    tpu.vector_store %arg10[%c1_56, %c1_57, %c0_58], %53 {strides = array<i32>} : memref<10x10x8xf32, #tpu.memory_space<vmem>>, vector<8x8x8xf32>,
    %c0_59 = arith.constant 0 : index
    %c0_60 = arith.constant 0 : index
    %c0_61 = arith.constant 0 : index
    %55 = vector.load %arg10[%c0_59, %c0_60, %c0_61] : memref<10x10x8xf32, #tpu.memory_space<vmem>>, vector<8x8x8xf32>
    %56 = vector.shape_cast %55 : vector<8x8x8xf32> to vector<64x8xf32>
    %c0_62 = arith.constant 0 : index
    %c0_63 = arith.constant 0 : index
    %57 = vector.load %arg9[%c0_62, %c0_63] : memref<64x288xf32, #tpu.memory_space<vmem>>, vector<64x8xf32>
    tpu.vector_store %arg9[%c0_62, %c0_63], %56 {strides = array<i32>} : memref<64x288xf32, #tpu.memory_space<vmem>>, vector<64x8xf32>,
    %c0_64 = arith.constant 0 : index
    %c1_65 = arith.constant 1 : index
    %c0_66 = arith.constant 0 : index
    %58 = vector.load %arg10[%c0_64, %c1_65, %c0_66] : memref<10x10x8xf32, #tpu.memory_space<vmem>>, vector<8x8x8xf32>
    %59 = vector.shape_cast %58 : vector<8x8x8xf32> to vector<64x8xf32>
    %c0_67 = arith.constant 0 : index
    %c8 = arith.constant 8 : index
    %60 = vector.load %arg9[%c0_67, %c8] : memref<64x288xf32, #tpu.memory_space<vmem>>, vector<64x8xf32>
    tpu.vector_store %arg9[%c0_67, %c8], %59 {strides = array<i32>} : memref<64x288xf32, #tpu.memory_space<vmem>>, vector<64x8xf32>,
    %c0_68 = arith.constant 0 : index
    %c2_69 = arith.constant 2 : index
    %c0_70 = arith.constant 0 : index
    %61 = vector.load %arg10[%c0_68, %c2_69, %c0_70] : memref<10x10x8xf32, #tpu.memory_space<vmem>>, vector<8x8x8xf32>
    %62 = vector.shape_cast %61 : vector<8x8x8xf32> to vector<64x8xf32>
    %c0_71 = arith.constant 0 : index
    %c16_72 = arith.constant 16 : index
    %63 = vector.load %arg9[%c0_71, %c16_72] : memref<64x288xf32, #tpu.memory_space<vmem>>, vector<64x8xf32>
    tpu.vector_store %arg9[%c0_71, %c16_72], %62 {strides = array<i32>} : memref<64x288xf32, #tpu.memory_space<vmem>>, vector<64x8xf32>,
    %c1_73 = arith.constant 1 : index
    %c0_74 = arith.constant 0 : index
    %c0_75 = arith.constant 0 : index
    %64 = vector.load %arg10[%c1_73, %c0_74, %c0_75] : memref<10x10x8xf32, #tpu.memory_space<vmem>>, vector<8x8x8xf32>
    %65 = vector.shape_cast %64 : vector<8x8x8xf32> to vector<64x8xf32>
    %c0_76 = arith.constant 0 : index
    %c24 = arith.constant 24 : index
    %66 = vector.load %arg9[%c0_76, %c24] : memref<64x288xf32, #tpu.memory_space<vmem>>, vector<64x8xf32>
    tpu.vector_store %arg9[%c0_76, %c24], %65 {strides = array<i32>} : memref<64x288xf32, #tpu.memory_space<vmem>>, vector<64x8xf32>,
    %c1_77 = arith.constant 1 : index
    %c1_78 = arith.constant 1 : index
    %c0_79 = arith.constant 0 : index
    %67 = vector.load %arg10[%c1_77, %c1_78, %c0_79] : memref<10x10x8xf32, #tpu.memory_space<vmem>>, vector<8x8x8xf32>
    %68 = vector.shape_cast %67 : vector<8x8x8xf32> to vector<64x8xf32>
    %c0_80 = arith.constant 0 : index
    %c32_81 = arith.constant 32 : index
    %69 = vector.load %arg9[%c0_80, %c32_81] : memref<64x288xf32, #tpu.memory_space<vmem>>, vector<64x8xf32>
    tpu.vector_store %arg9[%c0_80, %c32_81], %68 {strides = array<i32>} : memref<64x288xf32, #tpu.memory_space<vmem>>, vector<64x8xf32>,
    %c1_82 = arith.constant 1 : index
    %c2_83 = arith.constant 2 : index
    %c0_84 = arith.constant 0 : index
    %70 = vector.load %arg10[%c1_82, %c2_83, %c0_84] : memref<10x10x8xf32, #tpu.memory_space<vmem>>, vector<8x8x8xf32>
    %71 = vector.shape_cast %70 : vector<8x8x8xf32> to vector<64x8xf32>
    %c0_85 = arith.constant 0 : index
    %c40 = arith.constant 40 : index
    %72 = vector.load %arg9[%c0_85, %c40] : memref<64x288xf32, #tpu.memory_space<vmem>>, vector<64x8xf32>
    tpu.vector_store %arg9[%c0_85, %c40], %71 {strides = array<i32>} : memref<64x288xf32, #tpu.memory_space<vmem>>, vector<64x8xf32>,
    %c2_86 = arith.constant 2 : index
    %c0_87 = arith.constant 0 : index
    %c0_88 = arith.constant 0 : index
    %73 = vector.load %arg10[%c2_86, %c0_87, %c0_88] : memref<10x10x8xf32, #tpu.memory_space<vmem>>, vector<8x8x8xf32>
    %74 = vector.shape_cast %73 : vector<8x8x8xf32> to vector<64x8xf32>
    %c0_89 = arith.constant 0 : index
    %c48_90 = arith.constant 48 : index
    %75 = vector.load %arg9[%c0_89, %c48_90] : memref<64x288xf32, #tpu.memory_space<vmem>>, vector<64x8xf32>
    tpu.vector_store %arg9[%c0_89, %c48_90], %74 {strides = array<i32>} : memref<64x288xf32, #tpu.memory_space<vmem>>, vector<64x8xf32>,
    %c2_91 = arith.constant 2 : index
    %c1_92 = arith.constant 1 : index
    %c0_93 = arith.constant 0 : index
    %76 = vector.load %arg10[%c2_91, %c1_92, %c0_93] : memref<10x10x8xf32, #tpu.memory_space<vmem>>, vector<8x8x8xf32>
    %77 = vector.shape_cast %76 : vector<8x8x8xf32> to vector<64x8xf32>
    %c0_94 = arith.constant 0 : index
    %c56 = arith.constant 56 : index
    %78 = vector.load %arg9[%c0_94, %c56] : memref<64x288xf32, #tpu.memory_space<vmem>>, vector<64x8xf32>
    tpu.vector_store %arg9[%c0_94, %c56], %77 {strides = array<i32>} : memref<64x288xf32, #tpu.memory_space<vmem>>, vector<64x8xf32>,
    %c2_95 = arith.constant 2 : index
    %c2_96 = arith.constant 2 : index
    %c0_97 = arith.constant 0 : index
    %79 = vector.load %arg10[%c2_95, %c2_96, %c0_97] : memref<10x10x8xf32, #tpu.memory_space<vmem>>, vector<8x8x8xf32>
    %80 = vector.shape_cast %79 : vector<8x8x8xf32> to vector<64x8xf32>
    %c0_98 = arith.constant 0 : index
    %c64_99 = arith.constant 64 : index
    %81 = vector.load %arg9[%c0_98, %c64_99] : memref<64x288xf32, #tpu.memory_space<vmem>>, vector<64x8xf32>
    tpu.vector_store %arg9[%c0_98, %c64_99], %80 {strides = array<i32>} : memref<64x288xf32, #tpu.memory_space<vmem>>, vector<64x8xf32>,
    %c0_100 = arith.constant 0 : index
    %c0_101 = arith.constant 0 : index
    %82 = vector.load %arg9[%c0_100, %c0_101] : memref<64x288xf32, #tpu.memory_space<vmem>>, vector<64x72xf32>
    %83 = arith.truncf %82 : vector<64x72xf32> to vector<64x72xbf16>
    %c0_102 = arith.constant 0 : index
    %c0_103 = arith.constant 0 : index
    %84 = vector.load %arg4[%c0_102, %c0_103] : memref<72x40xbf16, #tpu.memory_space<vmem>>, vector<72x40xbf16>
    %cst_104 = arith.constant dense<0.000000e+00> : vector<64x40xf32>
    %85 = tpu.matmul %83, %84, %cst_104 {dimension_numbers = #tpu.dot_dimension_numbers<[1], [0], [0], [1], [0, 0, 1, 1], [], []>} : vector<64x72xbf16>, vector<72x40xbf16>, vector<64x40xf32> -> vector<64x40xf32>
    %c0_105 = arith.constant 0 : index
    %c0_106 = arith.constant 0 : index
    %86 = vector.load %arg5[%c0_105, %c0_106] : memref<2x40xf32, #tpu.memory_space<vmem>>, vector<1x40xf32>
    %87 = vector.broadcast %86 : vector<1x40xf32> to vector<64x40xf32>
    %88 = arith.addf %85, %87 : vector<64x40xf32>
    %c1_107 = arith.constant 1 : index
    %c0_108 = arith.constant 0 : index
    %89 = vector.load %arg5[%c1_107, %c0_108] : memref<2x40xf32, #tpu.memory_space<vmem>>, vector<1x40xf32>
    %cst_109 = arith.constant 0.000000e+00 : f32
    %90 = vector.broadcast %cst_109 : f32 to vector<64x40xf32>
    %91 = arith.cmpf ogt, %88, %90 : vector<64x40xf32>
    %92 = vector.broadcast %89 : vector<1x40xf32> to vector<64x40xf32>
    %93 = arith.mulf %92, %88 : vector<64x40xf32>
    %94 = arith.select %91, %88, %93 : vector<64x40xi1>, vector<64x40xf32>
    %95 = vector.extract_strided_slice %94 {offsets = [0, 0], sizes = [64, 32], strides = [1, 1]} : vector<64x40xf32> to vector<64x32xf32>
    %96 = vector.extract_strided_slice %94 {offsets = [0, 32], sizes = [64, 8], strides = [1, 1]} : vector<64x40xf32> to vector<64x8xf32>
    %97 = arith.subf %50, %95 : vector<64x32xf32>
    %cst_110 = arith.constant 0.000000e+00 : f32
    %98 = vector.broadcast %cst_110 : f32 to vector<10x10x32xf32>
    %c0_111 = arith.constant 0 : index
    %c0_112 = arith.constant 0 : index
    %c0_113 = arith.constant 0 : index
    %99 = vector.load %arg11[%c0_111, %c0_112, %c0_113] : memref<10x10x32xf32, #tpu.memory_space<vmem>>, vector<10x10x32xf32>
    tpu.vector_store %arg11[%c0_111, %c0_112, %c0_113], %98 {strides = array<i32>} : memref<10x10x32xf32, #tpu.memory_space<vmem>>, vector<10x10x32xf32>,
    %100 = vector.shape_cast %97 : vector<64x32xf32> to vector<8x8x32xf32>
    %c1_114 = arith.constant 1 : index
    %c1_115 = arith.constant 1 : index
    %c0_116 = arith.constant 0 : index
    %101 = vector.load %arg11[%c1_114, %c1_115, %c0_116] : memref<10x10x32xf32, #tpu.memory_space<vmem>>, vector<8x8x32xf32>
    tpu.vector_store %arg11[%c1_114, %c1_115, %c0_116], %100 {strides = array<i32>} : memref<10x10x32xf32, #tpu.memory_space<vmem>>, vector<8x8x32xf32>,
    %c0_117 = arith.constant 0 : index
    %c0_118 = arith.constant 0 : index
    %c0_119 = arith.constant 0 : index
    %102 = vector.load %arg11[%c0_117, %c0_118, %c0_119] : memref<10x10x32xf32, #tpu.memory_space<vmem>>, vector<8x8x32xf32>
    %103 = vector.shape_cast %102 : vector<8x8x32xf32> to vector<64x32xf32>
    %c0_120 = arith.constant 0 : index
    %c0_121 = arith.constant 0 : index
    %104 = vector.load %arg9[%c0_120, %c0_121] : memref<64x288xf32, #tpu.memory_space<vmem>>, vector<64x32xf32>
    tpu.vector_store %arg9[%c0_120, %c0_121], %103 {strides = array<i32>} : memref<64x288xf32, #tpu.memory_space<vmem>>, vector<64x32xf32>,
    %c0_122 = arith.constant 0 : index
    %c1_123 = arith.constant 1 : index
    %c0_124 = arith.constant 0 : index
    %105 = vector.load %arg11[%c0_122, %c1_123, %c0_124] : memref<10x10x32xf32, #tpu.memory_space<vmem>>, vector<8x8x32xf32>
    %106 = vector.shape_cast %105 : vector<8x8x32xf32> to vector<64x32xf32>
    %c0_125 = arith.constant 0 : index
    %c32_126 = arith.constant 32 : index
    %107 = vector.load %arg9[%c0_125, %c32_126] : memref<64x288xf32, #tpu.memory_space<vmem>>, vector<64x32xf32>
    tpu.vector_store %arg9[%c0_125, %c32_126], %106 {strides = array<i32>} : memref<64x288xf32, #tpu.memory_space<vmem>>, vector<64x32xf32>,
    %c0_127 = arith.constant 0 : index
    %c2_128 = arith.constant 2 : index
    %c0_129 = arith.constant 0 : index
    %108 = vector.load %arg11[%c0_127, %c2_128, %c0_129] : memref<10x10x32xf32, #tpu.memory_space<vmem>>, vector<8x8x32xf32>
    %109 = vector.shape_cast %108 : vector<8x8x32xf32> to vector<64x32xf32>
    %c0_130 = arith.constant 0 : index
    %c64_131 = arith.constant 64 : index
    %110 = vector.load %arg9[%c0_130, %c64_131] : memref<64x288xf32, #tpu.memory_space<vmem>>, vector<64x32xf32>
    tpu.vector_store %arg9[%c0_130, %c64_131], %109 {strides = array<i32>} : memref<64x288xf32, #tpu.memory_space<vmem>>, vector<64x32xf32>,
    %c1_132 = arith.constant 1 : index
    %c0_133 = arith.constant 0 : index
    %c0_134 = arith.constant 0 : index
    %111 = vector.load %arg11[%c1_132, %c0_133, %c0_134] : memref<10x10x32xf32, #tpu.memory_space<vmem>>, vector<8x8x32xf32>
    %112 = vector.shape_cast %111 : vector<8x8x32xf32> to vector<64x32xf32>
    %c0_135 = arith.constant 0 : index
    %c96_136 = arith.constant 96 : index
    %113 = vector.load %arg9[%c0_135, %c96_136] : memref<64x288xf32, #tpu.memory_space<vmem>>, vector<64x32xf32>
    tpu.vector_store %arg9[%c0_135, %c96_136], %112 {strides = array<i32>} : memref<64x288xf32, #tpu.memory_space<vmem>>, vector<64x32xf32>,
    %c1_137 = arith.constant 1 : index
    %c1_138 = arith.constant 1 : index
    %c0_139 = arith.constant 0 : index
    %114 = vector.load %arg11[%c1_137, %c1_138, %c0_139] : memref<10x10x32xf32, #tpu.memory_space<vmem>>, vector<8x8x32xf32>
    %115 = vector.shape_cast %114 : vector<8x8x32xf32> to vector<64x32xf32>
    %c0_140 = arith.constant 0 : index
    %c128_141 = arith.constant 128 : index
    %116 = vector.load %arg9[%c0_140, %c128_141] : memref<64x288xf32, #tpu.memory_space<vmem>>, vector<64x32xf32>
    tpu.vector_store %arg9[%c0_140, %c128_141], %115 {strides = array<i32>} : memref<64x288xf32, #tpu.memory_space<vmem>>, vector<64x32xf32>,
    %c1_142 = arith.constant 1 : index
    %c2_143 = arith.constant 2 : index
    %c0_144 = arith.constant 0 : index
    %117 = vector.load %arg11[%c1_142, %c2_143, %c0_144] : memref<10x10x32xf32, #tpu.memory_space<vmem>>, vector<8x8x32xf32>
    %118 = vector.shape_cast %117 : vector<8x8x32xf32> to vector<64x32xf32>
    %c0_145 = arith.constant 0 : index
    %c160 = arith.constant 160 : index
    %119 = vector.load %arg9[%c0_145, %c160] : memref<64x288xf32, #tpu.memory_space<vmem>>, vector<64x32xf32>
    tpu.vector_store %arg9[%c0_145, %c160], %118 {strides = array<i32>} : memref<64x288xf32, #tpu.memory_space<vmem>>, vector<64x32xf32>,
    %c2_146 = arith.constant 2 : index
    %c0_147 = arith.constant 0 : index
    %c0_148 = arith.constant 0 : index
    %120 = vector.load %arg11[%c2_146, %c0_147, %c0_148] : memref<10x10x32xf32, #tpu.memory_space<vmem>>, vector<8x8x32xf32>
    %121 = vector.shape_cast %120 : vector<8x8x32xf32> to vector<64x32xf32>
    %c0_149 = arith.constant 0 : index
    %c192 = arith.constant 192 : index
    %122 = vector.load %arg9[%c0_149, %c192] : memref<64x288xf32, #tpu.memory_space<vmem>>, vector<64x32xf32>
    tpu.vector_store %arg9[%c0_149, %c192], %121 {strides = array<i32>} : memref<64x288xf32, #tpu.memory_space<vmem>>, vector<64x32xf32>,
    %c2_150 = arith.constant 2 : index
    %c1_151 = arith.constant 1 : index
    %c0_152 = arith.constant 0 : index
    %123 = vector.load %arg11[%c2_150, %c1_151, %c0_152] : memref<10x10x32xf32, #tpu.memory_space<vmem>>, vector<8x8x32xf32>
    %124 = vector.shape_cast %123 : vector<8x8x32xf32> to vector<64x32xf32>
    %c0_153 = arith.constant 0 : index
    %c224 = arith.constant 224 : index
    %125 = vector.load %arg9[%c0_153, %c224] : memref<64x288xf32, #tpu.memory_space<vmem>>, vector<64x32xf32>
    tpu.vector_store %arg9[%c0_153, %c224], %124 {strides = array<i32>} : memref<64x288xf32, #tpu.memory_space<vmem>>, vector<64x32xf32>,
    %c2_154 = arith.constant 2 : index
    %c2_155 = arith.constant 2 : index
    %c0_156 = arith.constant 0 : index
    %126 = vector.load %arg11[%c2_154, %c2_155, %c0_156] : memref<10x10x32xf32, #tpu.memory_space<vmem>>, vector<8x8x32xf32>
    %127 = vector.shape_cast %126 : vector<8x8x32xf32> to vector<64x32xf32>
    %c0_157 = arith.constant 0 : index
    %c256 = arith.constant 256 : index
    %128 = vector.load %arg9[%c0_157, %c256] : memref<64x288xf32, #tpu.memory_space<vmem>>, vector<64x32xf32>
    tpu.vector_store %arg9[%c0_157, %c256], %127 {strides = array<i32>} : memref<64x288xf32, #tpu.memory_space<vmem>>, vector<64x32xf32>,
    %c0_158 = arith.constant 0 : index
    %c0_159 = arith.constant 0 : index
    %129 = vector.load %arg9[%c0_158, %c0_159] : memref<64x288xf32, #tpu.memory_space<vmem>>, vector<64x288xf32>
    %130 = arith.truncf %129 : vector<64x288xf32> to vector<64x288xbf16>
    %c0_160 = arith.constant 0 : index
    %c0_161 = arith.constant 0 : index
    %131 = vector.load %arg6[%c0_160, %c0_161] : memref<288x8xbf16, #tpu.memory_space<vmem>>, vector<288x8xbf16>
    %cst_162 = arith.constant dense<0.000000e+00> : vector<64x8xf32>
    %132 = tpu.matmul %130, %131, %cst_162 {dimension_numbers = #tpu.dot_dimension_numbers<[1], [0], [0], [1], [0, 0, 1, 1], [], []>} : vector<64x288xbf16>, vector<288x8xbf16>, vector<64x8xf32> -> vector<64x8xf32>
    %c0_163 = arith.constant 0 : index
    %c0_164 = arith.constant 0 : index
    %133 = vector.load %arg7[%c0_163, %c0_164] : memref<2x8xf32, #tpu.memory_space<vmem>>, vector<1x8xf32>
    %134 = vector.broadcast %133 : vector<1x8xf32> to vector<64x8xf32>
    %135 = arith.addf %132, %134 : vector<64x8xf32>
    %c1_165 = arith.constant 1 : index
    %c0_166 = arith.constant 0 : index
    %136 = vector.load %arg7[%c1_165, %c0_166] : memref<2x8xf32, #tpu.memory_space<vmem>>, vector<1x8xf32>
    %cst_167 = arith.constant 0.000000e+00 : f32
    %137 = vector.broadcast %cst_167 : f32 to vector<64x8xf32>
    %138 = arith.cmpf ogt, %135, %137 : vector<64x8xf32>
    %139 = vector.broadcast %136 : vector<1x8xf32> to vector<64x8xf32>
    %140 = arith.mulf %139, %135 : vector<64x8xf32>
    %141 = arith.select %138, %135, %140 : vector<64x8xi1>, vector<64x8xf32>
    %142 = arith.addf %96, %141 : vector<64x8xf32>
    %c0_168 = arith.constant 0 : index
    %c0_169 = arith.constant 0 : index
    %c0_170 = arith.constant 0 : index
    %143 = vector.load %arg8[%c0_168, %c0_169, %c0_170] : memref<1x64x8xf32, #tpu.memory_space<vmem>>, vector<1x64x8xf32>
    %144 = vector.shape_cast %143 : vector<1x64x8xf32> to vector<64x8xf32>
    %145 = vector.shape_cast %142 : vector<64x8xf32> to vector<1x64x8xf32>
    tpu.vector_store %arg8[%c0_168, %c0_169, %c0_170], %145 {strides = array<i32>} : memref<1x64x8xf32, #tpu.memory_space<vmem>>, vector<1x64x8xf32>,
    return
  }
  func.func @transform_0(%arg0: i32) -> (i32, i32, i32, i32) {
    %c0_i32 = arith.constant 0 : i32
    %c0_i32_0 = arith.constant 0 : i32
    %c0_i32_1 = arith.constant 0 : i32
    %c0_i32_2 = arith.constant 0 : i32
    return %arg0, %c0_i32, %c0_i32_0, %c0_i32_1 : i32, i32, i32, i32
  }
  func.func @transform_1(%arg0: i32) -> (i32, i32) {
    %c0_i32 = arith.constant 0 : i32
    %c0_i32_0 = arith.constant 0 : i32
    %c0_i32_1 = arith.constant 0 : i32
    return %c0_i32, %c0_i32_0 : i32, i32
  }
  func.func @transform_2(%arg0: i32) -> (i32, i32) {
    %c0_i32 = arith.constant 0 : i32
    %c0_i32_0 = arith.constant 0 : i32
    %c0_i32_1 = arith.constant 0 : i32
    return %c0_i32, %c0_i32_0 : i32, i32
  }
  func.func @transform_3(%arg0: i32) -> (i32, i32) {
    %c0_i32 = arith.constant 0 : i32
    %c0_i32_0 = arith.constant 0 : i32
    %c0_i32_1 = arith.constant 0 : i32
    return %c0_i32, %c0_i32_0 : i32, i32
  }
  func.func @transform_4(%arg0: i32) -> (i32, i32) {
    %c0_i32 = arith.constant 0 : i32
    %c0_i32_0 = arith.constant 0 : i32
    %c0_i32_1 = arith.constant 0 : i32
    return %c0_i32, %c0_i32_0 : i32, i32
  }
  func.func @transform_5(%arg0: i32) -> (i32, i32) {
    %c0_i32 = arith.constant 0 : i32
    %c0_i32_0 = arith.constant 0 : i32
    %c0_i32_1 = arith.constant 0 : i32
    return %c0_i32, %c0_i32_0 : i32, i32
  }
  func.func @transform_6(%arg0: i32) -> (i32, i32) {
    %c0_i32 = arith.constant 0 : i32
    %c0_i32_0 = arith.constant 0 : i32
    %c0_i32_1 = arith.constant 0 : i32
    return %c0_i32, %c0_i32_0 : i32, i32
  }
  func.func @transform_7(%arg0: i32) -> (i32, i32, i32) {
    %c0_i32 = arith.constant 0 : i32
    %c0_i32_0 = arith.constant 0 : i32
    %c0_i32_1 = arith.constant 0 : i32
    return %arg0, %c0_i32, %c0_i32_0 : i32, i32, i32
  }
}

</mosaic_0001>

<bundles_post_ra>
// kernel: tile.13
= control target key start
LH: loop header
LB: loop body
LE: loop exit
PB: predicated region body
PF: predicated region fallthrough
CT: control target
= control target key end

     0   :  { %s22_s0 = inlined_call_operand.vmem [shape: f32[8], index: 0, kind: input, shape index: {}]   ;;  %s23_s1 = inlined_call_operand.vmem [shape: f32[4,8], index: 1, kind: output, shape index: {}]  }
   0x1   :  { %v4_v0 = vld [vmem:[%s22_s0] ss:$0 sm:$0xff] }
   0x2   :  { %5 = vst [vmem:[%s23_s1] sm:$0xf] %v4_v0 }

// kernel: tile.14
= control target key start
LH: loop header
LB: loop body
LE: loop exit
PB: predicated region body
PF: predicated region fallthrough
CT: control target
= control target key end

     0   :  { %s37_s8 = smov 8   ;;  %s38_s9 = smov 16   ;;  %vm7_vm0 = vcmask 64512   ;;  %vm13_vm1 = vcmask 261312   ;;  %vm19_vm2 = vcmask 195712   ;;  %vm25_vm3 = vcmask 130112   ;;  %s55_s0 = inlined_call_operand.vmem [shape: f32[4,8], index: 0, kind: input, shape index: {}]   ;;  %s56_s1 = inlined_call_operand.vmem [shape: f32[32], index: 1, kind: output, shape index: {}]  }
   0x1   :  { %v4_v0 = vld [vmem:[%s55_s0] sm:$0xf]  ;;  %s36_s0 = smov 24  }
   0x2   :  { %5 = vst [vmem:[#allocation1] sm:$0xf] %v4_v0 }
   0x9   :  { %v10_v1 = vld [vmem:[#allocation1 + $0x3] sm:$0x1]   ;;  %v22_v2 = vld [vmem:[#allocation1 + $0x1] sm:$0x1]   ;;  %v16_v3 = vld [vmem:[#allocation1 + $0x2] sm:$0x1]  }
   0xa   :  { %11 = vrot.lane.b32.xlu0 %v10_v1, %s36_s0  ;;  %23 = vrot.lane.b32.xlu1 %v22_v2, %s37_s8  ;;  %v6_v4 = vld [vmem:[#allocation1] sm:$0x1]  }
   0xb   :  { %8 = vst.msk [vmem:[#allocation0] sm:$0x1] %vm7_vm0, %v6_v4  }
  0x12   :  { %17 = vrot.lane.b32.xlu0 %v16_v3, %s38_s9 }
  0x7c   :  { %v12_v5 = vpop.permute.xlu0 %11   ;;  %v24_v6 = vpop.permute.xlu1 %23  }
  0x7d   :  { %14 = vst.msk [vmem:[#allocation0] sm:$0x1] %vm13_vm1, %v12_v5  }
  0x84   :  { %v18_v7 = vpop.permute.xlu0 %17  }
  0x85   :  { %20 = vst.msk [vmem:[#allocation0] sm:$0x1] %vm19_vm2, %v18_v7  }
  0x86   :  { %26 = vst.msk [vmem:[#allocation0] sm:$0x1] %vm25_vm3, %v24_v6  }
  0x8d   :  { %v29_v8 = vld [vmem:[#allocation0] sm:$0x1] }
  0x8e   :  { %32 = vst [vmem:[%s56_s1] sm:$0x1] %v29_v8 }

// kernel: down_block_forward.1
= control target key start
LH: loop header
LB: loop body
LE: loop exit
PB: predicated region body
PF: predicated region fallthrough
CT: control target
= control target key end

     0   :  { %s2622_s24 = smov 0   ;;  %s3463_s0 = inlined_call_operand.vmem [shape: f32[2,10,10,16], index: 0, kind: input, shape index: {}]   ;;  %s3464_s1 = inlined_call_operand.vmem [shape: bf16[144,40], index: 1, kind: input, shape index: {}]   ;;  %s3465_s2 = inlined_call_operand.vmem [shape: f32[2,40], index: 2, kind: input, shape index: {}]   ;;  %s3466_s3 = inlined_call_operand.vmem [shape: bf16[72,40], index: 3, kind: input, shape index: {}]   ;;  %s3467_s4 = inlined_call_operand.vmem [shape: f32[2,40], index: 4, kind: input, shape index: {}]   ;;  %s3468_s5 = inlined_call_operand.vmem [shape: bf16[288,8], index: 5, kind: input, shape index: {}]   ;;  %s3469_s6 = inlined_call_operand.vmem [shape: f32[2,8], index: 6, kind: input, shape index: {}]   ;;  %s3470_s7 = inlined_call_operand.vmem [shape: f32[2,64,8], index: 7, kind: output, shape index: {}]  }
   0x1 LB: > { %s2299_s25 = sadd.s32 4294967295, %s2567_s24   ;;  %p2303_p0 = scmp.ge.s32.totalorder %s2567_s24, 1  ;;  %s2567_s24 = sphi %s2622_s24, %s17_s24  }
   0x2   : > { %p237_p1 = scmp.lt.s32.totalorder %s2567_s24, 3 }
   0x4   : > { %p238_p2 = pnand %p2303_p0, %p237_p1 }
   0x5   : > { %p269_p3 = scmp.lt.s32.totalorder (!%p238_p2), %s2299_s25, 1  ;;  %s2569_s30 = smov (!%p238_p2), 32  }
   0x6   : > { %241 = sbr.rel (%p238_p2) target bundleno = 1510 (0x5e6), region = 48  ;;  %s2570_s8 = smov (!%p238_p2), 16  }
   0x7   : > { %s2571_s9 = smov (!%p238_p2), 48   ;;  %s2572_s10 = smov (!%p238_p2), 64  }
   0x8   : > { %s2573_s11 = smov (!%p238_p2), 80   ;;  %s2574_s12 = smov (!%p238_p2), 96  }
   0x9   : > { %s2575_s13 = smov (!%p238_p2), 112   ;;  %s2578_s21 = smov (!%p238_p2), 24  }
   0xa   : > { %s2579_s22 = smov (!%p238_p2), 40   ;;  %s2580_s23 = smov (!%p238_p2), 56  }
   0xb   : > { %s3472_s25 = smov (!%p269_p3, %s2299_s25), 1  ;;  %vm288_vm0 = vcmask 130048   ;;  %v2501_v23 = vld [vmem:[%s3464_s1 + $0x38] sm:$0xff]  ;;  %v2500_v25 = vld [vmem:[%s3464_s1 + $0x30] sm:$0xff]  ;;  %v2499_v27 = vld [vmem:[%s3464_s1 + $0x28] sm:$0xff]  ;;  %vm337_vm1 = vcmask 261248  }
   0xc   : > { %s2533_s26 = smul.u32 160, %s3472_s25  ;;  %768 = vmatpush.bf16.msra.mxu0 %v2501_v23  ;;  %v2498_v28 = vld [vmem:[%s3464_s1 + $0x20] sm:$0xff]  ;;  %v2497_v31 = vld [vmem:[%s3464_s1 + $0x18] sm:$0xff]  ;;  %v2496_v33 = vld [vmem:[%s3464_s1 + $0x10] sm:$0xff]  ;;  %vm386_vm2 = vcmask 392448   ;;  %vm436_vm3 = vcmask 523648  }
   0xd   : > { %v2495_v37 = vld [vmem:[%s3464_s1 + $0x8] sm:$0xff]  ;;  %v2494_v38 = vld [vmem:[%s3464_s1] sm:$0xff]  ;;  %vm485_vm4 = vcmask 654848   ;;  %vm534_vm5 = vcmask 786048   ;;  %vm584_vm6 = vcmask 917248   ;;  %vm633_vm7 = vcmask 1048448  }
   0xe   : > { %s2636_s29 = scalar_lea.vmem %s3463_s0, %s2533_s26  ;;  %v2502_v42 = vld [vmem:[%s3464_s1 + $0x40] sm:$0xff]  ;;  %vm852_vm8 = vcmask 64512   ;;  %vm854_vm9 = vcmask 58368   ;;  %vm939_vm14 = vcmask 130112  }
   0xf   : > { %v346_v0 = vld [vmem:[%s2636_s29 + $0x2] sm:$0xff]  ;;  %v2307_v2 = vld [vmem:[%s2636_s29 + $0x10] sm:$0xff]  ;;  %804 = vmatpush.bf16.msra.mxu1 %v2502_v42  ;;  %2525 = vmatpush.bf16.msra.mxu3 %v2502_v42 }
  0x10   : > { %v297_v1 = vld [vmem:[%s2636_s29 + $0x1] sm:$0xff]  ;;  %362 = vrot.lane.b32.xlu1 %v346_v0, %s2569_s30  ;;  %412 = vrot.lane.b32.xlu2 %v2307_v2, %s2571_s9  ;;  %v347_v3 = vld [vmem:[%s2636_s29 + $0x12] sm:$0xff]  ;;  %290 = vst.msk [vmem:[#allocation2 + $0x18] sm:$0xff] %vm288_vm0, %v2307_v2 }
  0x11   : > { %313 = vrot.lane.b32.xlu0 %v297_v1, %s2570_s8  ;;  %v298_v4 = vld [vmem:[%s2636_s29 + $0x11] sm:$0xff]  ;;  %v2331_v5 = vld [vmem:[%s2636_s29 + $0x20] sm:$0xff]  ;;  %769 = vmatpush.bf16.msra.mxu0 %v2500_v25 }
  0x12   : > { %v2316_v6 = vld [vmem:[%s2636_s29 + $0x21] sm:$0xff]  ;;  %v2309_v8 = vld [vmem:[%s2636_s29 + $0x30] sm:$0xff]  ;;  %291 = vst.msk [vmem:[#allocation2 + $0x30] sm:$0xff] %vm288_vm0, %v2331_v5 }
  0x13   : > { %v2324_v7 = vld [vmem:[%s2636_s29 + $0x22] sm:$0xff]  ;;  %v2340_v9 = vld [vmem:[%s2636_s29 + $0x31] sm:$0xff]  ;;  %292 = vst.msk [vmem:[#allocation2 + $0x48] sm:$0xff] %vm288_vm0, %v2309_v8 }
  0x14   : > { %v2325_v10 = vld [vmem:[%s2636_s29 + $0x32] sm:$0xff]  ;;  %v2310_v11 = vld [vmem:[%s2636_s29 + $0x40] sm:$0xff]  ;;  %650 = vst.msk [vmem:[#allocation2 + $0x8] sm:$0xff] %vm288_vm0, %v2324_v7 }
  0x15   : > { %v2318_v12 = vld [vmem:[%s2636_s29 + $0x41] sm:$0xff]  ;;  %v2334_v14 = vld [vmem:[%s2636_s29 + $0x50] sm:$0xff]  ;;  %651 = vst.msk [vmem:[#allocation2 + $0x20] sm:$0xff] %vm288_vm0, %v2325_v10  ;;  %770 = vmatpush.bf16.msra.mxu0 %v2499_v27 }
  0x16   : > { %v350_v13 = vld [vmem:[%s2636_s29 + $0x42] sm:$0xff]  ;;  %v2342_v15 = vld [vmem:[%s2636_s29 + $0x51] sm:$0xff]  ;;  %293 = vst.msk [vmem:[#allocation2 + $0x60] sm:$0xff] %vm288_vm0, %v2310_v11 }
  0x17   : > { %v351_v16 = vld [vmem:[%s2636_s29 + $0x52] sm:$0xff]  ;;  %v280_v17 = vld [vmem:[%s2636_s29] sm:$0xff]  ;;  %294 = vst.msk [vmem:[#allocation2 + $0x78] sm:$0xff] %vm288_vm0, %v2334_v14 }
  0x18   : > { %364 = vrot.lane.b32.xlu1 %v347_v3, %s2569_s30  ;;  %414 = vrot.lane.b32.xlu2 %v2331_v5, %s2571_s9  ;;  %289 = vst.msk [vmem:[#allocation2] sm:$0xff] %vm288_vm0, %v280_v17  ;;  %v2312_v18 = vld [vmem:[%s2636_s29 + $0x60] sm:$0xff]  ;;  %v2336_v21 = vld [vmem:[%s2636_s29 + $0x70] sm:$0xff] }
  0x19   : > { %315 = vrot.lane.b32.xlu0 %v298_v4, %s2570_s8  ;;  %v2343_v19 = vld [vmem:[%s2636_s29 + $0x61] sm:$0xff]  ;;  %652 = vst.msk [vmem:[#allocation2 + $0x38] sm:$0xff] %vm288_vm0, %v350_v13  ;;  %v2711_v24 = vld [vmem:[%s2636_s29 + $0x72] sm:$0xff]  ;;  %771 = vmatpush.bf16.msra.mxu0 %v2498_v28 }
  0x1a   : > { %v2328_v20 = vld [vmem:[%s2636_s29 + $0x62] sm:$0xff]  ;;  %653 = vst.msk [vmem:[#allocation2 + $0x50] sm:$0xff] %vm288_vm0, %v351_v16  ;;  %v304_v29 = vld [vmem:[%s2636_s29 + $0x71] sm:$0xff] }
  0x1b   : > { %654 = vst.msk [vmem:[#allocation2 + $0x68] sm:$0xff] %vm288_vm0, %v2328_v20  ;;  %v2330_v32 = vld [vmem:[%s2636_s29 + $0x82] sm:$0xff]  ;;  %v2346_v54 = vld [vmem:[%s2636_s29 + $0x91] sm:$0xff] }
  0x1c   : > { %296 = vst.msk [vmem:[#allocation2 + $0xa8] sm:$0xff] %vm288_vm0, %v2336_v21  ;;  %v2337_v39 = vld [vmem:[%s2636_s29 + $0x80] sm:$0xff]  ;;  %v659_v45 = vld [vmem:[#allocation2 + $0x8] sm:$0xff]  ;;  %v2338_v55 = vld [vmem:[%s2636_s29 + $0x90] sm:$0xff] }
  0x1d   : > { %655 = vst.msk [vmem:[#allocation2 + $0x80] sm:$0xff] %vm288_vm0, %v2711_v24  ;;  %772 = vmatpush.bf16.msra.mxu0 %v2497_v31  ;;  %v2322_v44 = vld [vmem:[%s2636_s29 + $0x81] sm:$0xff] }
  0x1e   : > { %295 = vst.msk [vmem:[#allocation2 + $0x90] sm:$0xff] %vm288_vm0, %v2312_v18  ;;  %v661_v46 = vld [vmem:[#allocation2 + $0x20] sm:$0xff] }
  0x1f   : > { %656 = vst.msk [vmem:[#allocation2 + $0x98] sm:$0xff] %vm288_vm0, %v2330_v32  ;;  %v675_v47 = vpack.c.bf16 %v661_v46, %v659_v45  ;;  %v2576_v45 = vmov 0.0  }
  0x20   : > { %463 = vrot.lane.b32.xlu1 %v2316_v6, %s2572_s10  ;;  %510 = vrot.lane.b32.xlu2 %v347_v3, %s2573_s11  ;;  %v663_v1 = vld [vmem:[#allocation2 + $0x38] sm:$0xff]  ;;  %853 = vst.msk [vmem:[#allocation3] sm:$0xff] %vm852_vm8, %v2576_v45 }
  0x21   : > { %461 = vrot.lane.b32.xlu0 %v298_v4, %s2572_s10  ;;  %773 = vmatpush.bf16.msra.mxu0 %v2496_v33  ;;  %v665_v2 = vld [vmem:[#allocation2 + $0x50] sm:$0xff]  ;;  %855 = vst.msk [vmem:[#allocation3 + $0x8] sm:$0x3] %vm854_vm9, %v2576_v45 }
  0x22   : > { %2391 = vmatmul.msk.bf16.vlgmr.msra.gmra.mxu1 %vm288_vm0, %v675_v47  ;;  %v677_v3 = vpack.c.bf16 %v665_v2, %v663_v1  ;;  %856 = vst.msk [vmem:[#allocation3 + $0x10] sm:$0xff] %vm852_vm8, %v2576_v45 }
  0x23   : > { %857 = vst.msk [vmem:[#allocation3 + $0x18] sm:$0x3] %vm854_vm9, %v2576_v45 }
  0x24   : > { %858 = vst.msk [vmem:[#allocation3 + $0x20] sm:$0xff] %vm852_vm8, %v2576_v45 }
  0x25   : > { %774 = vmatpush.bf16.msra.mxu0 %v2495_v37  ;;  %859 = vst.msk [vmem:[#allocation3 + $0x28] sm:$0x3] %vm854_vm9, %v2576_v45 }
  0x26   : > { %860 = vst.msk [vmem:[#allocation3 + $0x30] sm:$0xff] %vm852_vm8, %v2576_v45 }
  0x27   : > { %861 = vst.msk [vmem:[#allocation3 + $0x38] sm:$0x3] %vm854_vm9, %v2576_v45 }
  0x28   : > { %560 = vrot.lane.b32.xlu1 %v2331_v5, %s2574_s12  ;;  %562 = vrot.lane.b32.xlu2 %v2309_v8, %s2574_s12  ;;  %862 = vst.msk [vmem:[#allocation3 + $0x40] sm:$0xff] %vm852_vm8, %v2576_v45 }
  0x29   : > { %512 = vrot.lane.b32.xlu0 %v2324_v7, %s2573_s11  ;;  %775 = vmatpush.bf16.msra.mxu0 %v2494_v38  ;;  %863 = vst.msk [vmem:[#allocation3 + $0x48] sm:$0x3] %vm854_vm9, %v2576_v45 }
  0x2a   : > { %864 = vst.msk [vmem:[#allocation3 + $0x50] sm:$0xff] %vm852_vm8, %v2576_v45 }
  0x2b   : > { %865 = vst.msk [vmem:[#allocation3 + $0x58] sm:$0x3] %vm854_vm9, %v2576_v45 }
  0x2c   : > { %866 = vst.msk [vmem:[#allocation3 + $0x60] sm:$0xff] %vm852_vm8, %v2576_v45 }
  0x2d   : > { %867 = vst.msk [vmem:[#allocation3 + $0x68] sm:$0x3] %vm854_vm9, %v2576_v45 }
  0x2e   : > { %868 = vst.msk [vmem:[#allocation3 + $0x70] sm:$0xff] %vm852_vm8, %v2576_v45 }
  0x2f   : > { %869 = vst.msk [vmem:[#allocation3 + $0x78] sm:$0x3] %vm854_vm9, %v2576_v45 }
  0x30   : > { %611 = vrot.lane.b32.xlu1 %v2340_v9, %s2575_s13  ;;  %317 = vrot.lane.b32.xlu2 %v2316_v6, %s2570_s8  ;;  %870 = vst.msk [vmem:[#allocation3 + $0x80] sm:$0xff] %vm852_vm8, %v2576_v45 }
  0x31   : > { %609 = vrot.lane.b32.xlu0 %v2316_v6, %s2575_s13  ;;  %871 = vst.msk [vmem:[#allocation3 + $0x88] sm:$0x3] %vm854_vm9, %v2576_v45 }
  0x32   : > { %2392 = vmatmul.msk.bf16.gmra.mxu1 %vm288_vm0, %v677_v3  ;;  %872 = vst.msk [vmem:[#allocation3 + $0x90] sm:$0xff] %vm852_vm8, %v2576_v45 }
  0x33   : > { %873 = vst.msk [vmem:[#allocation3 + $0x98] sm:$0x3] %vm854_vm9, %v2576_v45  ;;  %vm1185_vm9 = vcmask 458112  }
  0x38   : > { %366 = vrot.lane.b32.xlu1 %v2324_v7, %s2569_s30  ;;  %368 = vrot.lane.b32.xlu2 %v2325_v10, %s2569_s30 }
  0x39   : > { %319 = vrot.lane.b32.xlu0 %v2340_v9, %s2570_s8 }
  0x40   : > { %418 = vrot.lane.b32.xlu1 %v2310_v11, %s2571_s9  ;;  %465 = vrot.lane.b32.xlu2 %v2340_v9, %s2572_s10 }
  0x41   : > { %416 = vrot.lane.b32.xlu0 %v2309_v8, %s2571_s9 }
  0x48   : > { %514 = vrot.lane.b32.xlu1 %v2325_v10, %s2573_s11  ;;  %516 = vrot.lane.b32.xlu2 %v350_v13, %s2573_s11 }
  0x49   : > { %467 = vrot.lane.b32.xlu0 %v2318_v12, %s2572_s10 }
  0x50   : > { %566 = vrot.lane.b32.xlu1 %v2334_v14, %s2574_s12  ;;  %613 = vrot.lane.b32.xlu2 %v2318_v12, %s2575_s13 }
  0x51   : > { %564 = vrot.lane.b32.xlu0 %v2310_v11, %s2574_s12 }
  0x58   : > { %321 = vrot.lane.b32.xlu1 %v2318_v12, %s2570_s8  ;;  %323 = vrot.lane.b32.xlu2 %v2342_v15, %s2570_s8 }
  0x59   : > { %615 = vrot.lane.b32.xlu0 %v2342_v15, %s2575_s13 }
  0x60   : > { %372 = vrot.lane.b32.xlu1 %v351_v16, %s2569_s30  ;;  %420 = vrot.lane.b32.xlu2 %v2334_v14, %s2571_s9  ;;  %v667_v14 = vld [vmem:[#allocation2 + $0x68] sm:$0xff] }
  0x61   : > { %370 = vrot.lane.b32.xlu0 %v350_v13, %s2569_s30 }
  0x68   : > { %469 = vrot.lane.b32.xlu1 %v2342_v15, %s2572_s10  ;;  %471 = vrot.lane.b32.xlu2 %v2343_v19, %s2572_s10  ;;  %v669_v15 = vld [vmem:[#allocation2 + $0x80] sm:$0xff] }
  0x69   : > { %422 = vrot.lane.b32.xlu0 %v2312_v18, %s2571_s9 }
  0x6a   : > { %v413_v22 = vpop.permute.xlu2 %412 }
  0x70   : > { %520 = vrot.lane.b32.xlu1 %v2328_v20, %s2573_s11  ;;  %568 = vrot.lane.b32.xlu2 %v2312_v18, %s2574_s12 }
  0x71   : > { %518 = vrot.lane.b32.xlu0 %v351_v16, %s2573_s11  ;;  %v679_v16 = vpack.c.bf16 %v669_v15, %v667_v14 }
  0x72   : > { %v415_v26 = vpop.permute.xlu2 %414 }
  0x73   : > { %2393 = vmatmul.msk.bf16.vlgmr.msra.gmra.mxu3 %vm288_vm0, %v679_v16 }
  0x78   : > { %617 = vrot.lane.b32.xlu1 %v2343_v19, %s2575_s13  ;;  %619 = vrot.lane.b32.xlu2 %v304_v29, %s2575_s13 }
  0x79   : > { %570 = vrot.lane.b32.xlu0 %v2336_v21, %s2574_s12 }
  0x7a   : > { %v511_v30 = vpop.permute.xlu2 %510 }
  0x80   : > { %327 = vrot.lane.b32.xlu1 %v304_v29, %s2570_s8  ;;  %374 = vrot.lane.b32.xlu2 %v2328_v20, %s2569_s30 }
  0x81   : > { %325 = vrot.lane.b32.xlu0 %v2343_v19, %s2570_s8 }
  0x82   : > { %v363_v34 = vpop.permute.xlu1 %362  ;;  %v563_v36 = vpop.permute.xlu2 %562 }
  0x83   : > { %v314_v35 = vpop.permute.xlu0 %313 }
  0x84   : > { %338 = vst.msk [vmem:[#allocation2] sm:$0xff] %vm337_vm1, %v314_v35 }
  0x85   : > { %387 = vst.msk [vmem:[#allocation2] sm:$0xff] %vm386_vm2, %v363_v34 }
  0x86   : > { %437 = vst.msk [vmem:[#allocation2] sm:$0xff] %vm436_vm3, %v413_v22 }
  0x88   : > { %424 = vrot.lane.b32.xlu1 %v2336_v21, %s2571_s9  ;;  %426 = vrot.lane.b32.xlu2 %v2337_v39, %s2571_s9 }
  0x89   : > { %376 = vrot.lane.b32.xlu0 %v2711_v24, %s2569_s30 }
  0x8a   : > { %v365_v40 = vpop.permute.xlu1 %364  ;;  %v318_v43 = vpop.permute.xlu2 %317 }
  0x8b   : > { %v316_v41 = vpop.permute.xlu0 %315  ;;  %340 = vst.msk [vmem:[#allocation2 + $0x30] sm:$0xff] %vm337_vm1, %v318_v43 }
  0x8c   : > { %339 = vst.msk [vmem:[#allocation2 + $0x18] sm:$0xff] %vm337_vm1, %v316_v41  ;;  %v671_v41 = vld [vmem:[#allocation2 + $0x98] sm:$0xff] }
  0x8d   : > { %388 = vst.msk [vmem:[#allocation2 + $0x18] sm:$0xff] %vm386_vm2, %v365_v40 }
  0x8e   : > { %438 = vst.msk [vmem:[#allocation2 + $0x18] sm:$0xff] %vm436_vm3, %v415_v26 }
  0x90   : > { %475 = vrot.lane.b32.xlu1 %v2322_v44, %s2572_s10  ;;  %522 = vrot.lane.b32.xlu2 %v2711_v24, %s2573_s11 }
  0x91   : > { %473 = vrot.lane.b32.xlu0 %v304_v29, %s2572_s10 }
  0x92   : > { %v464_v48 = vpop.permute.xlu1 %463  ;;  %v369_v50 = vpop.permute.xlu2 %368 }
  0x93   : > { %v462_v49 = vpop.permute.xlu0 %461  ;;  %487 = vst.msk [vmem:[#allocation2 + $0x18] sm:$0xff] %vm485_vm4, %v464_v48  ;;  %v948_v48 = vld [vmem:[#allocation3 + $0x2] sm:$0xff] }
  0x94   : > { %486 = vst.msk [vmem:[#allocation2] sm:$0xff] %vm485_vm4, %v462_v49 }
  0x95   : > { %535 = vst.msk [vmem:[#allocation2] sm:$0xff] %vm534_vm5, %v511_v30 }
  0x98   : > { %572 = vrot.lane.b32.xlu1 %v2337_v39, %s2574_s12  ;;  %574 = vrot.lane.b32.xlu2 %v2338_v55, %s2574_s12 }
  0x99   : > { %524 = vrot.lane.b32.xlu0 %v2330_v32, %s2573_s11 }
  0x9a   : > { %v561_v51 = vpop.permute.xlu1 %560  ;;  %v466_v53 = vpop.permute.xlu2 %465 }
  0x9b   : > { %v513_v52 = vpop.permute.xlu0 %512  ;;  %585 = vst.msk [vmem:[#allocation2] sm:$0xff] %vm584_vm6, %v561_v51 }
  0x9c   : > { %536 = vst.msk [vmem:[#allocation2 + $0x18] sm:$0xff] %vm534_vm5, %v513_v52 }
  0x9d   : > { %586 = vst.msk [vmem:[#allocation2 + $0x18] sm:$0xff] %vm584_vm6, %v563_v36  ;;  %v2354_v36 = vld [vmem:[%s2636_s29 + $0x92] sm:$0xff]  ;;  %s2577_s29 = smov 8  }
  0x9e   : > { %657 = vst.msk [vmem:[#allocation2 + $0xb0] sm:$0xff] %vm288_vm0, %v2354_v36 }
  0xa0   : > { %623 = vrot.lane.b32.xlu1 %v2346_v54, %s2575_s13  ;;  %v899_v54 = vld [vmem:[#allocation3 + $0x1] sm:$0xff] }
  0xa1   : > { %621 = vrot.lane.b32.xlu0 %v2322_v44, %s2575_s13  ;;  %915 = vrot.lane.b32.xlu2 %v899_v54, %s2577_s29 }
  0xa2   : > { %v612_v56 = vpop.permute.xlu1 %611  ;;  %v517_v58 = vpop.permute.xlu2 %516 }
  0xa3   : > { %v610_v57 = vpop.permute.xlu0 %609  ;;  %635 = vst.msk [vmem:[#allocation2 + $0x18] sm:$0xff] %vm633_vm7, %v612_v56 }
  0xa4   : > { %634 = vst.msk [vmem:[#allocation2] sm:$0xff] %vm633_vm7, %v610_v57 }
  0xa5   : > { %v673_v42 = vld [vmem:[#allocation2 + $0xb0] sm:$0xff] }
  0xa6   : > { %v681_v43 = vpack.c.bf16 %v673_v42, %v671_v41 }
  0xa8   : > { %2394 = vmatmul.msk.bf16.gmra.mxu3 %vm288_vm0, %v681_v43  ;;  %964 = vrot.lane.b32.xlu1 %v948_v48, %s2570_s8  ;;  %vm988_vm0 = vcmask 195712  }
  0xaa   : > { %v367_v60 = vpop.permute.xlu1 %366  ;;  %v660_v61 = vld [vmem:[#allocation2 + $0x18] sm:$0xff]  ;;  %v614_v0 = vpop.permute.xlu2 %613 }
  0xab   : > { %v320_v59 = vpop.permute.xlu0 %319  ;;  %v658_v62 = vld [vmem:[#allocation2] sm:$0xff]  ;;  %389 = vst.msk [vmem:[#allocation2 + $0x30] sm:$0xff] %vm386_vm2, %v367_v60  ;;  %v806_v60 = vpop.f32.mrf.mxu1 }
  0xac   : > { %341 = vst.msk [vmem:[#allocation2 + $0x48] sm:$0xff] %vm337_vm1, %v320_v59  ;;  %v674_v63 = vpack.c.bf16 %v660_v61, %v658_v62  ;;  %v2878_v59 = vld [vmem:[%s3465_s2] ss:$0 sm:$0xff] }
  0xad   : > { %390 = vst.msk [vmem:[#allocation2 + $0x48] sm:$0xff] %vm386_vm2, %v369_v50 }
  0xae   : > { %776 = vmatmul.bf16.vlgmr.msra.gmra.mxu0 %v674_v63  ;;  %v2884_v63 = vld [vmem:[%s3465_s2 + $0x1] ss:$0 sm:$0xff] }
  0xb2   : > { %v419_v5 = vpop.permute.xlu1 %418  ;;  %v324_v6 = vpop.permute.xlu2 %323 }
  0xb3   : > { %v417_v4 = vpop.permute.xlu0 %416  ;;  %440 = vst.msk [vmem:[#allocation2 + $0x48] sm:$0xff] %vm436_vm3, %v419_v5 }
  0xb4   : > { %439 = vst.msk [vmem:[#allocation2 + $0x30] sm:$0xff] %vm436_vm3, %v417_v4  ;;  %v808_v4 = vpop.f32.mrf.mxu1 }
  0xb5   : > { %488 = vst.msk [vmem:[#allocation2 + $0x30] sm:$0xff] %vm485_vm4, %v466_v53 }
  0xb6   : > { %343 = vst.msk [vmem:[#allocation2 + $0x78] sm:$0xff] %vm337_vm1, %v324_v6 }
  0xba   : > { %v515_v8 = vpop.permute.xlu1 %514  ;;  %v421_v11 = vpop.permute.xlu2 %420 }
  0xbb   : > { %v468_v7 = vpop.permute.xlu0 %467  ;;  %537 = vst.msk [vmem:[#allocation2 + $0x30] sm:$0xff] %vm534_vm5, %v515_v8 }
  0xbc   : > { %489 = vst.msk [vmem:[#allocation2 + $0x48] sm:$0xff] %vm485_vm4, %v468_v7  ;;  %v811_v15 = vpop.f32.mrf.mxu1 }
  0xbd   : > { %538 = vst.msk [vmem:[#allocation2 + $0x48] sm:$0xff] %vm534_vm5, %v517_v58  ;;  %v1152_v58 = vld [vmem:[#allocation3 + $0x90] sm:$0xff] }
  0xbe   : > { %1175 = vrot.lane.b32.xlu1 %v1152_v58, %s2571_s9 }
  0xc2   : > { %v567_v10 = vpop.permute.xlu1 %566  ;;  %v472_v17 = vpop.permute.xlu2 %471 }
  0xc3   : > { %v565_v9 = vpop.permute.xlu0 %564  ;;  %588 = vst.msk [vmem:[#allocation2 + $0x48] sm:$0xff] %vm584_vm6, %v567_v10 }
  0xc4   : > { %587 = vst.msk [vmem:[#allocation2 + $0x30] sm:$0xff] %vm584_vm6, %v565_v9 }
  0xc5   : > { %636 = vst.msk [vmem:[#allocation2 + $0x30] sm:$0xff] %vm633_vm7, %v614_v0 }
  0xca   : > { %v322_v13 = vpop.permute.xlu1 %321  ;;  %v569_v23 = vpop.permute.xlu2 %568 }
  0xcb   : > { %v616_v12 = vpop.permute.xlu0 %615  ;;  %342 = vst.msk [vmem:[#allocation2 + $0x60] sm:$0xff] %vm337_vm1, %v322_v13 }
  0xcc   : > { %637 = vst.msk [vmem:[#allocation2 + $0x48] sm:$0xff] %vm633_vm7, %v616_v12  ;;  %v662_v18 = vld [vmem:[#allocation2 + $0x30] sm:$0xff] }
  0xd2   : > { %v373_v20 = vpop.permute.xlu1 %372  ;;  %v620_v28 = vpop.permute.xlu2 %619 }
  0xd3   : > { %v371_v19 = vpop.permute.xlu0 %370  ;;  %v664_v21 = vld [vmem:[#allocation2 + $0x48] sm:$0xff]  ;;  %392 = vst.msk [vmem:[#allocation2 + $0x78] sm:$0xff] %vm386_vm2, %v373_v20 }
  0xd4   : > { %391 = vst.msk [vmem:[#allocation2 + $0x60] sm:$0xff] %vm386_vm2, %v371_v19  ;;  %v676_v22 = vpack.c.bf16 %v664_v21, %v662_v18 }
  0xd5   : > { %441 = vst.msk [vmem:[#allocation2 + $0x60] sm:$0xff] %vm436_vm3, %v421_v11 }
  0xd6   : > { %781 = vmatmul.bf16.gmra.mxu0 %v676_v22 }
  0xda   : > { %v470_v25 = vpop.permute.xlu1 %469  ;;  %v375_v31 = vpop.permute.xlu2 %374 }
  0xdb   : > { %v423_v24 = vpop.permute.xlu0 %422  ;;  %490 = vst.msk [vmem:[#allocation2 + $0x60] sm:$0xff] %vm485_vm4, %v470_v25 }
  0xdc   : > { %442 = vst.msk [vmem:[#allocation2 + $0x78] sm:$0xff] %vm436_vm3, %v423_v24 }
  0xdd   : > { %491 = vst.msk [vmem:[#allocation2 + $0x78] sm:$0xff] %vm485_vm4, %v472_v17 }
  0xe2   : > { %v521_v27 = vpop.permute.xlu1 %520  ;;  %v427_v38 = vpop.permute.xlu2 %426 }
  0xe3   : > { %v519_v26 = vpop.permute.xlu0 %518  ;;  %540 = vst.msk [vmem:[#allocation2 + $0x78] sm:$0xff] %vm534_vm5, %v521_v27 }
  0xe4   : > { %539 = vst.msk [vmem:[#allocation2 + $0x60] sm:$0xff] %vm534_vm5, %v519_v26 }
  0xe5   : > { %589 = vst.msk [vmem:[#allocation2 + $0x60] sm:$0xff] %vm584_vm6, %v569_v23  ;;  %v813_v23 = vpop.f32.mrf.mxu1 }
  0xea   : > { %v618_v30 = vpop.permute.xlu1 %617  ;;  %v523_v44 = vpop.permute.xlu2 %522 }
  0xeb   : > { %v571_v29 = vpop.permute.xlu0 %570  ;;  %638 = vst.msk [vmem:[#allocation2 + $0x60] sm:$0xff] %vm633_vm7, %v618_v30 }
  0xec   : > { %590 = vst.msk [vmem:[#allocation2 + $0x78] sm:$0xff] %vm584_vm6, %v571_v29 }
  0xed   : > { %639 = vst.msk [vmem:[#allocation2 + $0x78] sm:$0xff] %vm633_vm7, %v620_v28 }
  0xf2   : > { %v328_v32 = vpop.permute.xlu1 %327  ;;  %v666_v34 = vld [vmem:[#allocation2 + $0x60] sm:$0xff]  ;;  %v575_v49 = vpop.permute.xlu2 %574 }
  0xf3   : > { %v326_v33 = vpop.permute.xlu0 %325  ;;  %345 = vst.msk [vmem:[#allocation2 + $0xa8] sm:$0xff] %vm337_vm1, %v328_v32 }
  0xf4   : > { %v668_v35 = vld [vmem:[#allocation2 + $0x78] sm:$0xff]  ;;  %344 = vst.msk [vmem:[#allocation2 + $0x90] sm:$0xff] %vm337_vm1, %v326_v33 }
  0xf5   : > { %v678_v37 = vpack.c.bf16 %v668_v35, %v666_v34  ;;  %393 = vst.msk [vmem:[#allocation2 + $0x90] sm:$0xff] %vm386_vm2, %v375_v31  ;;  %v883_v31 = vld [vmem:[#allocation3] sm:$0xff] }
  0xf6   : > { %891 = vst.msk [vmem:[#allocation2] sm:$0xff] %vm852_vm8, %v883_v31  ;;  %v816_v33 = vpop.f32.mrf.mxu3 }
  0xf7   : > { %786 = vmatmul.bf16.gmra.mxu0 %v678_v37 }
  0xfa   : > { %v425_v39 = vpop.permute.xlu1 %424 }
  0xfb   : > { %v377_v40 = vpop.permute.xlu0 %376  ;;  %443 = vst.msk [vmem:[#allocation2 + $0x90] sm:$0xff] %vm436_vm3, %v425_v39  ;;  %v916_v32 = vpop.permute.xlu2 %915 }
  0xfc   : > { %394 = vst.msk [vmem:[#allocation2 + $0xa8] sm:$0xff] %vm386_vm2, %v377_v40 }
  0xfd   : > { %444 = vst.msk [vmem:[#allocation2 + $0xa8] sm:$0xff] %vm436_vm3, %v427_v38 }
  0xfe   : > { %940 = vst.msk [vmem:[#allocation2] sm:$0xff] %vm939_vm14, %v916_v32  ;;  %v818_v41 = vpop.f32.mrf.mxu3 }
 0x102   : > { %v476_v46 = vpop.permute.xlu1 %475 }
 0x103   : > { %v474_v47 = vpop.permute.xlu0 %473  ;;  %493 = vst.msk [vmem:[#allocation2 + $0xa8] sm:$0xff] %vm485_vm4, %v476_v46 }
 0x104   : > { %492 = vst.msk [vmem:[#allocation2 + $0x90] sm:$0xff] %vm485_vm4, %v474_v47  ;;  %vm1355_vm4 = vcmask 1043456  }
 0x105   : > { %541 = vst.msk [vmem:[#allocation2 + $0x90] sm:$0xff] %vm534_vm5, %v523_v44 }
 0x10a   : > { %v573_v50 = vpop.permute.xlu1 %572 }
 0x10b   : > { %v525_v51 = vpop.permute.xlu0 %524  ;;  %591 = vst.msk [vmem:[#allocation2 + $0x90] sm:$0xff] %vm584_vm6, %v573_v50 }
 0x10c   : > { %542 = vst.msk [vmem:[#allocation2 + $0xa8] sm:$0xff] %vm534_vm5, %v525_v51  ;;  %vm1037_vm5 = vcmask 261312  }
 0x10d   : > { %592 = vst.msk [vmem:[#allocation2 + $0xa8] sm:$0xff] %vm584_vm6, %v575_v49  ;;  %vm1086_vm6 = vcmask 326912  }
 0x112   : > { %v624_v52 = vpop.permute.xlu1 %623 }
 0x113   : > { %v622_v53 = vpop.permute.xlu0 %621  ;;  %641 = vst.msk [vmem:[#allocation2 + $0xa8] sm:$0xff] %vm633_vm7, %v624_v52 }
 0x114   : > { %640 = vst.msk [vmem:[#allocation2 + $0x90] sm:$0xff] %vm633_vm7, %v622_v53  ;;  %vm1135_vm7 = vcmask 392512  }
 0x11a   : > { %v672_v55 = vld [vmem:[#allocation2 + $0xa8] sm:$0xff]  ;;  %v965_v43 = vpop.permute.xlu1 %964 }
 0x11b   : > { %v670_v56 = vld [vmem:[#allocation2 + $0x90] sm:$0xff]  ;;  %989 = vst.msk [vmem:[#allocation2] sm:$0xff] %vm988_vm0, %v965_v43 }
 0x11c   : > { %v680_v57 = vpack.c.bf16 %v672_v55, %v670_v56  ;;  %v1250_v43 = vld [vmem:[#allocation3 + $0x92] sm:$0xff] }
 0x11e   : > { %791 = vmatmul.bf16.gmra.mxu0 %v680_v57 }
 0x12b   : > { %v777_v61 = vpop.f32.mrf.mxu0  ;;  %v821_v54 = vpop.f32.mrf.mxu3 }
 0x12c   : > { %v778_v62 = vadd.f32 %v2878_v59, %v777_v61 }
 0x12e   : > { %v807_v0 = vadd.f32 %v806_v60, %v778_v62 }
 0x130   : > { %vm827_vm10 = vcmp.gt.f32.partialorder %v807_v0, 0.0  ;;  %v836_v1 = vmul.f32 %v2884_v63, %v807_v0 }
 0x132   : > { %v2887_v2 = vsel %vm827_vm10, %v807_v0, %v836_v1  ;;  %v2974_v1 = vpop.permute.xlu1 %1175  ;;  %vm1234_vm10 = vcmask 523712  }
 0x133   : > { %875 = vst.msk [vmem:[#allocation3 + $0x11] sm:$0xff] %vm852_vm8, %v2887_v2  ;;  %v779_v3 = vpop.f32.mrf.mxu0  ;;  %v823_v0 = vpop.f32.mrf.mxu3 }
 0x134   : > { %v780_v5 = vadd.f32 %v2878_v59, %v779_v3 }
 0x136   : > { %v809_v6 = vadd.f32 %v808_v4, %v780_v5 }
 0x138   : > { %vm828_vm11 = vcmp.gt.f32.partialorder %v809_v6, 0.0  ;;  %v837_v7 = vmul.f32 %v2884_v63, %v809_v6 }
 0x13a   : > { %v2893_v8 = vsel %vm828_vm11, %v809_v6, %v837_v7  ;;  %v1046_v9 = vld [vmem:[#allocation3 + $0x11] sm:$0xff]  ;;  %v1312_v7 = vld [vmem:[%s3466_s3 + $0x20] sm:$0xf]  ;;  %vm1283_vm11 = vcmask 589312  }
 0x13b   : > { %v949_v10 = vld [vmem:[#allocation3 + $0x12] sm:$0xff]  ;;  %876 = vst.msk [vmem:[#allocation3 + $0x21] sm:$0xff] %vm852_vm8, %v2893_v8  ;;  %1062 = vrot.lane.b32.xlu1 %v1046_v9, %s2569_s30  ;;  %917 = vrot.lane.b32.xlu0 %v1046_v9, %s2577_s29 }
 0x13c   : > { %v997_v11 = vld [vmem:[#allocation3 + $0x10] sm:$0xff]  ;;  %966 = vrot.lane.b32.xlu2 %v949_v10, %s2570_s8 }
 0x13d   : > { %892 = vst.msk [vmem:[#allocation2 + $0x18] sm:$0xff] %vm852_vm8, %v997_v11 }
 0x142   : > { %v998_v12 = vld [vmem:[#allocation3 + $0x20] sm:$0xff] }
 0x143   : > { %1015 = vrot.lane.b32.xlu1 %v998_v12, %s2578_s21  ;;  %893 = vst.msk [vmem:[#allocation2 + $0x30] sm:$0xff] %vm852_vm8, %v998_v12  ;;  %1013 = vrot.lane.b32.xlu0 %v997_v11, %s2578_s21  ;;  %v1194_v13 = vld [vmem:[#allocation3 + $0x21] sm:$0xff] }
 0x144   : > { %1111 = vrot.lane.b32.xlu2 %v949_v10, %s2579_s22  ;;  %v950_v14 = vld [vmem:[#allocation3 + $0x22] sm:$0xff]  ;;  %v1332_v10 = vunpack.c.l.b16 %v1312_v7 }
 0x14b   : > { %1210 = vrot.lane.b32.xlu1 %v1194_v13, %s2580_s23  ;;  %968 = vrot.lane.b32.xlu0 %v950_v14, %s2570_s8 }
 0x14c   : > { %919 = vrot.lane.b32.xlu2 %v1194_v13, %s2577_s29 }
 0x153   : > { %v782_v16 = vpop.f32.mrf.mxu0  ;;  %1113 = vrot.lane.b32.xlu0 %v950_v14, %s2579_s22 }
 0x154   : > { %v783_v17 = vadd.f32 %v2878_v59, %v782_v16  ;;  %1064 = vrot.lane.b32.xlu2 %v1194_v13, %s2569_s30  ;;  %v1337_v13 = vpack.c.b16 %v1332_v10, %v1332_v10 }
 0x156   : > { %v812_v18 = vadd.f32 %v811_v15, %v783_v17 }
 0x158   : > { %vm829_vm12 = vcmp.gt.f32.partialorder %v812_v18, 0.0  ;;  %v838_v19 = vmul.f32 %v2884_v63, %v812_v18 }
 0x15a   : > { %v2912_v20 = vsel %vm829_vm12, %v812_v18, %v838_v19  ;;  %v2506_v18 = vld [vmem:[%s3466_s3 + $0x18] sm:$0xff]  ;;  %vm1342_vm12 = vcmask 588800  }
 0x15b   : > { %877 = vst.msk [vmem:[#allocation3 + $0x31] sm:$0xff] %vm852_vm8, %v2912_v20  ;;  %v784_v21 = vpop.f32.mrf.mxu0  ;;  %1161 = vrot.lane.b32.xlu0 %v998_v12, %s2571_s9 }
 0x15c   : > { %v785_v22 = vadd.f32 %v2878_v59, %v784_v21  ;;  %1259 = vrot.lane.b32.xlu2 %v950_v14, %s2572_s10  ;;  %v1357_v14 = vsel %vm1355_vm4, %v1337_v13, 0 }
 0x15d   : > { %1362 = vmatpush.bf16.msrb.mxu0 %v1357_v14  ;;  %2526 = vmatpush.bf16.msra.mxu2 %v1357_v14 }
 0x15e   : > { %v814_v24 = vadd.f32 %v813_v23, %v785_v22 }
 0x160   : > { %vm830_vm13 = vcmp.gt.f32.partialorder %v814_v24, 0.0  ;;  %v839_v25 = vmul.f32 %v2884_v63, %v814_v24 }
 0x161   : > { %1363 = vmatpush.bf16.msrb.mxu0 %v2506_v18  ;;  %2527 = vmatpush.bf16.msra.mxu2 %v2506_v18 }
 0x162   : > { %v2920_v26 = vsel %vm830_vm13, %v814_v24, %v839_v25  ;;  %v951_v27 = vld [vmem:[#allocation3 + $0x32] sm:$0xff]  ;;  %vm1454_vm13 = vcmask 261120  }
 0x163   : > { %v1048_v28 = vld [vmem:[#allocation3 + $0x31] sm:$0xff]  ;;  %878 = vst.msk [vmem:[#allocation3 + $0x41] sm:$0xff] %vm852_vm8, %v2920_v26  ;;  %970 = vrot.lane.b32.xlu1 %v951_v27, %s2570_s8 }
 0x164   : > { %v999_v29 = vld [vmem:[#allocation3 + $0x30] sm:$0xff]  ;;  %1066 = vrot.lane.b32.xlu2 %v1048_v28, %s2569_s30  ;;  %921 = vrot.lane.b32.xlu0 %v1048_v28, %s2577_s29  ;;  %1455 = vst.msk [vmem:[#allocation4] sm:$0xff] %vm1454_vm13, %v2576_v45 }
 0x165   : > { %894 = vst.msk [vmem:[#allocation2 + $0x48] sm:$0xff] %vm852_vm8, %v999_v29 }
 0x166   : > { %1458 = vst.msk [vmem:[#allocation4 + $0x10] sm:$0xff] %vm1454_vm13, %v2576_v45 }
 0x167   : > { %1460 = vst.msk [vmem:[#allocation4 + $0x20] sm:$0xff] %vm1454_vm13, %v2576_v45 }
 0x168   : > { %1462 = vst.msk [vmem:[#allocation4 + $0x30] sm:$0xff] %vm1454_vm13, %v2576_v45 }
 0x169   : > { %1464 = vst.msk [vmem:[#allocation4 + $0x40] sm:$0xff] %vm1454_vm13, %v2576_v45 }
 0x16a   : > { %v1000_v30 = vld [vmem:[#allocation3 + $0x40] sm:$0xff]  ;;  %1466 = vst.msk [vmem:[#allocation4 + $0x50] sm:$0xff] %vm1454_vm13, %v2576_v45 }
 0x16b   : > { %1017 = vrot.lane.b32.xlu1 %v999_v29, %s2578_s21  ;;  %895 = vst.msk [vmem:[#allocation2 + $0x60] sm:$0xff] %vm852_vm8, %v1000_v30  ;;  %v1098_v38 = vld [vmem:[#allocation3 + $0x42] sm:$0xff] }
 0x16c   : > { %1212 = vrot.lane.b32.xlu2 %v1048_v28, %s2580_s23  ;;  %1115 = vrot.lane.b32.xlu0 %v951_v27, %s2579_s22  ;;  %v1049_v40 = vld [vmem:[#allocation3 + $0x41] sm:$0xff]  ;;  %1468 = vst.msk [vmem:[#allocation4 + $0x60] sm:$0xff] %vm1454_vm13, %v2576_v45 }
 0x16d   : > { %1470 = vst.msk [vmem:[#allocation4 + $0x70] sm:$0xff] %vm1454_vm13, %v2576_v45 }
 0x16e   : > { %1472 = vst.msk [vmem:[#allocation4 + $0x80] sm:$0xff] %vm1454_vm13, %v2576_v45 }
 0x16f   : > { %1474 = vst.msk [vmem:[#allocation4 + $0x90] sm:$0xff] %vm1454_vm13, %v2576_v45 }
 0x173   : > { %1163 = vrot.lane.b32.xlu1 %v999_v29, %s2571_s9 }
 0x174   : > { %1019 = vrot.lane.b32.xlu2 %v1000_v30, %s2578_s21  ;;  %1261 = vrot.lane.b32.xlu0 %v951_v27, %s2572_s10  ;;  %v787_v34 = vpop.f32.mrf.mxu0  ;;  %v2505_v27 = vld [vmem:[%s3466_s3 + $0x10] sm:$0xff] }
 0x175   : > { %v788_v35 = vadd.f32 %v2878_v59, %v787_v34  ;;  %1364 = vmatpush.bf16.msrb.mxu0 %v2505_v27  ;;  %2528 = vmatpush.bf16.msra.mxu2 %v2505_v27 }
 0x177   : > { %v817_v36 = vadd.f32 %v816_v33, %v788_v35 }
 0x179   : > { %vm831_vm15 = vcmp.gt.f32.partialorder %v817_v36, 0.0  ;;  %v840_v37 = vmul.f32 %v2884_v63, %v817_v36 }
 0x17b   : > { %1117 = vrot.lane.b32.xlu1 %v1098_v38, %s2579_s22  ;;  %v2940_v39 = vsel %vm831_vm15, %v817_v36, %v840_v37  ;;  %v2503_v36 = vld [vmem:[%s3466_s3] sm:$0xff]  ;;  %vm1456_vm15 = vcmask 254976  }
 0x17c   : > { %1263 = vrot.lane.b32.xlu2 %v1098_v38, %s2572_s10  ;;  %879 = vst.msk [vmem:[#allocation3 + $0x51] sm:$0xff] %vm852_vm8, %v2940_v39  ;;  %1068 = vrot.lane.b32.xlu0 %v1049_v40, %s2569_s30  ;;  %v789_v42 = vpop.f32.mrf.mxu0 }
 0x17d   : > { %v790_v44 = vadd.f32 %v2878_v59, %v789_v42  ;;  %v1201_v42 = vld [vmem:[#allocation3 + $0x91] sm:$0xff]  ;;  %1457 = vst.msk [vmem:[#allocation4 + $0x8] sm:$0x3] %vm1456_vm15, %v2576_v45 }
 0x17e   : > { %1459 = vst.msk [vmem:[#allocation4 + $0x18] sm:$0x3] %vm1456_vm15, %v2576_v45 }
 0x17f   : > { %v819_v46 = vadd.f32 %v818_v41, %v790_v44  ;;  %1461 = vst.msk [vmem:[#allocation4 + $0x28] sm:$0x3] %vm1456_vm15, %v2576_v45 }
 0x180   : > { %1463 = vst.msk [vmem:[#allocation4 + $0x38] sm:$0x3] %vm1456_vm15, %v2576_v45 }
 0x181   : > { %vm832_vm1 = vcmp.gt.f32.partialorder %v819_v46, 0.0  ;;  %v841_v47 = vmul.f32 %v2884_v63, %v819_v46  ;;  %1465 = vst.msk [vmem:[#allocation4 + $0x48] sm:$0x3] %vm1456_vm15, %v2576_v45 }
 0x182   : > { %1467 = vst.msk [vmem:[#allocation4 + $0x58] sm:$0x3] %vm1456_vm15, %v2576_v45 }
 0x183   : > { %1165 = vrot.lane.b32.xlu1 %v1000_v30, %s2571_s9  ;;  %v2950_v48 = vsel %vm832_vm1, %v819_v46, %v841_v47  ;;  %v1148_v49 = vld [vmem:[#allocation3 + $0x50] sm:$0xff]  ;;  %v2504_v30 = vld [vmem:[%s3466_s3 + $0x8] sm:$0xff]  ;;  %1469 = vst.msk [vmem:[#allocation4 + $0x68] sm:$0x3] %vm1456_vm15, %v2576_v45 }
 0x184   : > { %880 = vst.msk [vmem:[#allocation3 + $0x61] sm:$0xff] %vm852_vm8, %v2950_v48  ;;  %1214 = vrot.lane.b32.xlu0 %v1049_v40, %s2580_s23  ;;  %1167 = vrot.lane.b32.xlu2 %v1148_v49, %s2571_s9  ;;  %v904_v50 = vld [vmem:[#allocation3 + $0x51] sm:$0xff] }
 0x185   : > { %896 = vst.msk [vmem:[#allocation2 + $0x78] sm:$0xff] %vm852_vm8, %v1148_v49  ;;  %v1246_v52 = vld [vmem:[#allocation3 + $0x52] sm:$0xff]  ;;  %1365 = vmatpush.bf16.msrb.mxu0 %v2504_v30  ;;  %2529 = vmatpush.bf16.msra.mxu2 %v2504_v30 }
 0x186   : > { %1471 = vst.msk [vmem:[#allocation4 + $0x78] sm:$0x3] %vm1456_vm15, %v2576_v45 }
 0x187   : > { %1473 = vst.msk [vmem:[#allocation4 + $0x88] sm:$0x3] %vm1456_vm15, %v2576_v45 }
 0x188   : > { %1475 = vst.msk [vmem:[#allocation4 + $0x98] sm:$0x3] %vm1456_vm15, %v2576_v45 }
 0x189   : > { %1366 = vmatpush.bf16.msrb.mxu0 %v2503_v36  ;;  %2530 = vmatpush.bf16.msra.mxu2 %v2503_v36 }
 0x18b   : > { %923 = vrot.lane.b32.xlu1 %v1049_v40, %s2577_s29  ;;  %v1002_v51 = vld [vmem:[#allocation3 + $0x60] sm:$0xff] }
 0x18c   : > { %972 = vrot.lane.b32.xlu0 %v1098_v38, %s2570_s8  ;;  %925 = vrot.lane.b32.xlu2 %v904_v50, %s2577_s29  ;;  %897 = vst.msk [vmem:[#allocation2 + $0x90] sm:$0xff] %vm852_vm8, %v1002_v51  ;;  %v1051_v55 = vld [vmem:[#allocation3 + $0x61] sm:$0xff] }
 0x18d   : > { %v1100_v11 = vld [vmem:[#allocation3 + $0x62] sm:$0xff] }
 0x193   : > { %1216 = vrot.lane.b32.xlu1 %v904_v50, %s2580_s23 }
 0x194   : > { %1265 = vrot.lane.b32.xlu0 %v1246_v52, %s2572_s10  ;;  %1021 = vrot.lane.b32.xlu2 %v1148_v49, %s2578_s21 }
 0x196   : > { %v967_v53 = vpop.permute.xlu2 %966 }
 0x19b   : > { %974 = vrot.lane.b32.xlu1 %v1246_v52, %s2570_s8  ;;  %v792_v56 = vpop.f32.mrf.mxu0 }
 0x19c   : > { %1119 = vrot.lane.b32.xlu0 %v1246_v52, %s2579_s22  ;;  %1072 = vrot.lane.b32.xlu2 %v1051_v55, %s2569_s30  ;;  %v793_v57 = vadd.f32 %v2878_v59, %v792_v56 }
 0x19e   : > { %v1112_v58 = vpop.permute.xlu2 %1111  ;;  %v822_v60 = vadd.f32 %v821_v54, %v793_v57 }
 0x1a0   : > { %vm833_vm2 = vcmp.gt.f32.partialorder %v822_v60, 0.0  ;;  %v842_v61 = vmul.f32 %v2884_v63, %v822_v60 }
 0x1a2   : > { %v2970_v62 = vsel %vm833_vm2, %v822_v60, %v842_v61 }
 0x1a3   : > { %1070 = vrot.lane.b32.xlu1 %v904_v50, %s2569_s30  ;;  %881 = vst.msk [vmem:[#allocation3 + $0x71] sm:$0xff] %vm852_vm8, %v2970_v62  ;;  %v794_v3 = vpop.f32.mrf.mxu0 }
 0x1a4   : > { %1023 = vrot.lane.b32.xlu0 %v1002_v51, %s2578_s21  ;;  %1169 = vrot.lane.b32.xlu2 %v1002_v51, %s2571_s9  ;;  %v795_v4 = vadd.f32 %v2878_v59, %v794_v3 }
 0x1a6   : > { %v920_v5 = vpop.permute.xlu2 %919  ;;  %v824_v6 = vadd.f32 %v823_v0, %v795_v4 }
 0x1a7   : > { %942 = vst.msk [vmem:[#allocation2 + $0x30] sm:$0xff] %vm939_vm14, %v920_v5 }
 0x1a8   : > { %vm834_vm3 = vcmp.gt.f32.partialorder %v824_v6, 0.0  ;;  %v843_v9 = vmul.f32 %v2884_v63, %v824_v6 }
 0x1aa   : > { %v2985_v12 = vsel %vm834_vm3, %v824_v6, %v843_v9  ;;  %v1150_v59 = vld [vmem:[#allocation3 + $0x70] sm:$0xff]  ;;  %vm1573_vm3 = vcmask 523520  }
 0x1ab   : > { %1121 = vrot.lane.b32.xlu1 %v1100_v11, %s2579_s22  ;;  %882 = vst.msk [vmem:[#allocation3 + $0x81] sm:$0xff] %vm852_vm8, %v2985_v12  ;;  %v1199_v17 = vld [vmem:[#allocation3 + $0x71] sm:$0xff] }
 0x1ac   : > { %1267 = vrot.lane.b32.xlu0 %v1100_v11, %s2572_s10  ;;  %927 = vrot.lane.b32.xlu2 %v1051_v55, %s2577_s29  ;;  %898 = vst.msk [vmem:[#allocation2 + $0xa8] sm:$0xff] %vm852_vm8, %v1150_v59  ;;  %v955_v23 = vld [vmem:[#allocation3 + $0x72] sm:$0xff] }
 0x1ad   : > { %v1063_v63 = vpop.permute.xlu1 %1062  ;;  %v918_v16 = vpop.permute.xlu0 %917 }
 0x1ae   : > { %v1065_v15 = vpop.permute.xlu2 %1064  ;;  %941 = vst.msk [vmem:[#allocation2 + $0x18] sm:$0xff] %vm939_vm14, %v918_v16 }
 0x1af   : > { %990 = vst.msk [vmem:[#allocation2 + $0x18] sm:$0xff] %vm988_vm0, %v967_v53 }
 0x1b2   : > { %v1053_v31 = vld [vmem:[#allocation3 + $0x81] sm:$0xff] }
 0x1b3   : > { %1218 = vrot.lane.b32.xlu1 %v1051_v55, %s2580_s23  ;;  %v1102_v32 = vld [vmem:[#allocation3 + $0x82] sm:$0xff] }
 0x1b4   : > { %1171 = vrot.lane.b32.xlu0 %v1150_v59, %s2571_s9  ;;  %1220 = vrot.lane.b32.xlu2 %v1199_v17, %s2580_s23  ;;  %v1004_v37 = vld [vmem:[#allocation3 + $0x80] sm:$0xff] }
 0x1b5   : > { %v1016_v19 = vpop.permute.xlu1 %1015  ;;  %v1014_v22 = vpop.permute.xlu0 %1013 }
 0x1b6   : > { %v1260_v21 = vpop.permute.xlu2 %1259  ;;  %1039 = vst.msk [vmem:[#allocation2 + $0x18] sm:$0xff] %vm1037_vm5, %v1016_v19 }
 0x1b7   : > { %1038 = vst.msk [vmem:[#allocation2] sm:$0xff] %vm1037_vm5, %v1014_v22 }
 0x1b8   : > { %1087 = vst.msk [vmem:[#allocation2] sm:$0xff] %vm1086_vm6, %v1063_v63 }
 0x1b9   : > { %1088 = vst.msk [vmem:[#allocation2 + $0x18] sm:$0xff] %vm1086_vm6, %v1065_v15 }
 0x1ba   : > { %1136 = vst.msk [vmem:[#allocation2] sm:$0xff] %vm1135_vm7, %v1112_v58 }
 0x1bb   : > { %976 = vrot.lane.b32.xlu1 %v1100_v11, %s2570_s8 }
 0x1bc   : > { %929 = vrot.lane.b32.xlu0 %v1199_v17, %s2577_s29  ;;  %978 = vrot.lane.b32.xlu2 %v955_v23, %s2570_s8 }
 0x1bd   : > { %v969_v25 = vpop.permute.xlu0 %968  ;;  %v1211_v33 = vpop.permute.xlu1 %1210 }
 0x1be   : > { %v1067_v24 = vpop.permute.xlu2 %1066  ;;  %991 = vst.msk [vmem:[#allocation2 + $0x30] sm:$0xff] %vm988_vm0, %v969_v25 }
 0x1c3   : > { %1269 = vrot.lane.b32.xlu1 %v955_v23, %s2572_s10 }
 0x1c4   : > { %1025 = vrot.lane.b32.xlu0 %v1150_v59, %s2578_s21  ;;  %1074 = vrot.lane.b32.xlu2 %v1199_v17, %s2569_s30 }
 0x1c5   : > { %v1114_v29 = vpop.permute.xlu0 %1113 }
 0x1c6   : > { %v1213_v28 = vpop.permute.xlu2 %1212  ;;  %1137 = vst.msk [vmem:[#allocation2 + $0x18] sm:$0xff] %vm1135_vm7, %v1114_v29 }
 0x1cb   : > { %1123 = vrot.lane.b32.xlu1 %v955_v23, %s2579_s22 }
 0x1cc   : > { %1076 = vrot.lane.b32.xlu0 %v1053_v31, %s2569_s30  ;;  %1125 = vrot.lane.b32.xlu2 %v1102_v32, %s2579_s22 }
 0x1cd   : > { %v1162_v35 = vpop.permute.xlu0 %1161 }
 0x1ce   : > { %v1020_v34 = vpop.permute.xlu2 %1019  ;;  %1186 = vst.msk [vmem:[#allocation2] sm:$0xff] %vm1185_vm9, %v1162_v35  ;;  %v1533_v35 = vld [vmem:[#allocation4 + $0x1] sm:$0xff] }
 0x1cf   : > { %1235 = vst.msk [vmem:[#allocation2] sm:$0xff] %vm1234_vm10, %v1211_v33 }
 0x1d0   : > { %1284 = vst.msk [vmem:[#allocation2] sm:$0xff] %vm1283_vm11, %v1260_v21 }
 0x1d3   : > { %1027 = vrot.lane.b32.xlu1 %v1004_v37, %s2578_s21  ;;  %s2581_s21 = smov 120  }
 0x1d4   : > { %1173 = vrot.lane.b32.xlu0 %v1004_v37, %s2571_s9  ;;  %1222 = vrot.lane.b32.xlu2 %v1053_v31, %s2580_s23 }
 0x1d5   : > { %v971_v38 = vpop.permute.xlu1 %970 }
 0x1d6   : > { %v1264_v40 = vpop.permute.xlu2 %1263  ;;  %v922_v41 = vpop.permute.xlu0 %921 }
 0x1d7   : > { %943 = vst.msk [vmem:[#allocation2 + $0x48] sm:$0xff] %vm939_vm14, %v922_v41  ;;  %v1292_v55 = vld [vmem:[#allocation2] sm:$0xff] }
 0x1d8   : > { %992 = vst.msk [vmem:[#allocation2 + $0x48] sm:$0xff] %vm988_vm0, %v971_v38 }
 0x1d9   : > { %1041 = vst.msk [vmem:[#allocation2 + $0x48] sm:$0xff] %vm1037_vm5, %v1020_v34  ;;  %v1582_v34 = vld [vmem:[#allocation4 + $0x2] sm:$0xff] }
 0x1db   : > { %1271 = vrot.lane.b32.xlu1 %v1102_v32, %s2572_s10 }
 0x1dc   : > { %1224 = vrot.lane.b32.xlu0 %v1201_v42, %s2580_s23  ;;  %1273 = vrot.lane.b32.xlu2 %v1250_v43, %s2572_s10 }
 0x1dd   : > { %v1018_v44 = vpop.permute.xlu1 %1017 }
 0x1de   : > { %1040 = vst.msk [vmem:[#allocation2 + $0x30] sm:$0xff] %vm1037_vm5, %v1018_v44  ;;  %v1116_v46 = vpop.permute.xlu0 %1115  ;;  %v1168_v47 = vpop.permute.xlu2 %1167 }
 0x1df   : > { %1089 = vst.msk [vmem:[#allocation2 + $0x30] sm:$0xff] %vm1086_vm6, %v1067_v24 }
 0x1e0   : > { %1138 = vst.msk [vmem:[#allocation2 + $0x30] sm:$0xff] %vm1135_vm7, %v1116_v46  ;;  %v1752_v46 = vld [vmem:[#allocation4 + $0x90] sm:$0xff] }
 0x1e3   : > { %1549 = vrot.lane.b32.xlu1 %v1533_v35, %s2569_s30 }
 0x1e4   : > { %1598 = vrot.lane.b32.xlu0 %v1582_v34, %s2572_s10 }
 0x1e5   : > { %v1164_v49 = vpop.permute.xlu1 %1163 }
 0x1e6   : > { %1187 = vst.msk [vmem:[#allocation2 + $0x18] sm:$0xff] %vm1185_vm9, %v1164_v49  ;;  %v1262_v50 = vpop.permute.xlu0 %1261  ;;  %v926_v51 = vpop.permute.xlu2 %925  ;;  %v2557_v49 = vld [vmem:[%s3467_s4] ss:$0 sm:$0xff] }
 0x1e7   : > { %1236 = vst.msk [vmem:[#allocation2 + $0x18] sm:$0xff] %vm1234_vm10, %v1213_v28 }
 0x1e8   : > { %1285 = vst.msk [vmem:[#allocation2 + $0x18] sm:$0xff] %vm1283_vm11, %v1262_v50  ;;  %v2558_v50 = vld [vmem:[%s3467_s4 + $0x1] ss:$0 sm:$0xff] }
 0x1e9   : > { %945 = vst.msk [vmem:[#allocation2 + $0x78] sm:$0xff] %vm939_vm14, %v926_v51 }
 0x1eb   : > { %1775 = vrot.lane.b32.xlu1 %v1752_v46, %s2572_s10 }
 0x1ed   : > { %v1118_v52 = vpop.permute.xlu1 %1117 }
 0x1ee   : > { %v1069_v53 = vpop.permute.xlu0 %1068  ;;  %v1022_v54 = vpop.permute.xlu2 %1021 }
 0x1ef   : > { %v1293_v56 = vld [vmem:[#allocation2 + $0x18] sm:$0xff]  ;;  %1090 = vst.msk [vmem:[#allocation2 + $0x48] sm:$0xff] %vm1086_vm6, %v1069_v53 }
 0x1f0   : > { %v1300_v57 = vpack.c.bf16 %v1293_v56, %v1292_v55  ;;  %1139 = vst.msk [vmem:[#allocation2 + $0x48] sm:$0xff] %vm1135_vm7, %v1118_v52 }
 0x1f1   : > { %1189 = vst.msk [vmem:[#allocation2 + $0x48] sm:$0xff] %vm1185_vm9, %v1168_v47  ;;  %v1800_v47 = vld [vmem:[#allocation4 + $0x91] sm:$0xff] }
 0x1f2   : > { %2411 = vmatmul.msk.bf16.vlgmr.msrb.gmra.mxu0 %vm1342_vm12, %v1300_v57  ;;  %1823 = vrot.lane.b32.xlu0 %v1800_v47, %s2574_s12 }
 0x1f5   : > { %v1166_v58 = vpop.permute.xlu1 %1165 }
 0x1f6   : > { %1188 = vst.msk [vmem:[#allocation2 + $0x30] sm:$0xff] %vm1185_vm9, %v1166_v58  ;;  %v1215_v60 = vpop.permute.xlu0 %1214  ;;  %v1073_v61 = vpop.permute.xlu2 %1072 }
 0x1f7   : > { %1237 = vst.msk [vmem:[#allocation2 + $0x30] sm:$0xff] %vm1234_vm10, %v1215_v60 }
 0x1f8   : > { %1286 = vst.msk [vmem:[#allocation2 + $0x30] sm:$0xff] %vm1283_vm11, %v1264_v40 }
 0x1fd   : > { %v924_v0 = vpop.permute.xlu1 %923 }
 0x1fe   : > { %944 = vst.msk [vmem:[#allocation2 + $0x60] sm:$0xff] %vm939_vm14, %v924_v0  ;;  %v973_v3 = vpop.permute.xlu0 %972  ;;  %v1170_v4 = vpop.permute.xlu2 %1169 }
 0x1ff   : > { %993 = vst.msk [vmem:[#allocation2 + $0x60] sm:$0xff] %vm988_vm0, %v973_v3  ;;  %v1294_v11 = vld [vmem:[#allocation2 + $0x30] sm:$0xff] }
 0x200   : > { %1042 = vst.msk [vmem:[#allocation2 + $0x60] sm:$0xff] %vm1037_vm5, %v1022_v54 }
 0x205   : > { %v1217_v5 = vpop.permute.xlu1 %1216 }
 0x206   : > { %1238 = vst.msk [vmem:[#allocation2 + $0x48] sm:$0xff] %vm1234_vm10, %v1217_v5  ;;  %v1266_v6 = vpop.permute.xlu0 %1265  ;;  %v928_v7 = vpop.permute.xlu2 %927 }
 0x207   : > { %1287 = vst.msk [vmem:[#allocation2 + $0x48] sm:$0xff] %vm1283_vm11, %v1266_v6 }
 0x208   : > { %946 = vst.msk [vmem:[#allocation2 + $0x90] sm:$0xff] %vm939_vm14, %v928_v7  ;;  %v1517_v7 = vld [vmem:[#allocation4] sm:$0xff] }
 0x209   : > { %1525 = vst.msk [vmem:[#allocation2] sm:$0xff] %vm1454_vm13, %v1517_v7 }
 0x20d   : > { %v975_v9 = vpop.permute.xlu1 %974 }
 0x20e   : > { %994 = vst.msk [vmem:[#allocation2 + $0x78] sm:$0xff] %vm988_vm0, %v975_v9  ;;  %v1120_v10 = vpop.permute.xlu0 %1119  ;;  %v1295_v13 = vld [vmem:[#allocation2 + $0x48] sm:$0xff]  ;;  %v1221_v16 = vpop.permute.xlu2 %1220 }
 0x20f   : > { %v1301_v59 = vpack.c.bf16 %v1295_v13, %v1294_v11 }
 0x211   : > { %2412 = vmatmul.msk.bf16.vlgmr.msra.gmra.mxu2 %vm1342_vm12, %v1301_v59 }
 0x215   : > { %v1071_v14 = vpop.permute.xlu1 %1070 }
 0x216   : > { %1091 = vst.msk [vmem:[#allocation2 + $0x60] sm:$0xff] %vm1086_vm6, %v1071_v14  ;;  %v1024_v63 = vpop.permute.xlu0 %1023  ;;  %v979_v21 = vpop.permute.xlu2 %978 }
 0x217   : > { %1140 = vst.msk [vmem:[#allocation2 + $0x60] sm:$0xff] %vm1135_vm7, %v1120_v10 }
 0x218   : > { %1190 = vst.msk [vmem:[#allocation2 + $0x60] sm:$0xff] %vm1185_vm9, %v1170_v4 }
 0x219   : > { %1043 = vst.msk [vmem:[#allocation2 + $0x78] sm:$0xff] %vm1037_vm5, %v1024_v63 }
 0x21a   : > { %1092 = vst.msk [vmem:[#allocation2 + $0x78] sm:$0xff] %vm1086_vm6, %v1073_v61 }
 0x21d   : > { %v1122_v15 = vpop.permute.xlu1 %1121 }
 0x21e   : > { %1141 = vst.msk [vmem:[#allocation2 + $0x78] sm:$0xff] %vm1135_vm7, %v1122_v15  ;;  %v1268_v17 = vpop.permute.xlu0 %1267  ;;  %v1075_v24 = vpop.permute.xlu2 %1074 }
 0x225   : > { %v1219_v18 = vpop.permute.xlu1 %1218 }
 0x226   : > { %1239 = vst.msk [vmem:[#allocation2 + $0x60] sm:$0xff] %vm1234_vm10, %v1219_v18  ;;  %v1172_v19 = vpop.permute.xlu0 %1171  ;;  %v1126_v28 = vpop.permute.xlu2 %1125 }
 0x227   : > { %1288 = vst.msk [vmem:[#allocation2 + $0x60] sm:$0xff] %vm1283_vm11, %v1268_v17 }
 0x228   : > { %1191 = vst.msk [vmem:[#allocation2 + $0x78] sm:$0xff] %vm1185_vm9, %v1172_v19 }
 0x229   : > { %1240 = vst.msk [vmem:[#allocation2 + $0x78] sm:$0xff] %vm1234_vm10, %v1221_v16 }
 0x22d   : > { %v977_v22 = vpop.permute.xlu1 %976 }
 0x22e   : > { %995 = vst.msk [vmem:[#allocation2 + $0x90] sm:$0xff] %vm988_vm0, %v977_v22  ;;  %v930_v23 = vpop.permute.xlu0 %929  ;;  %v1296_v30 = vld [vmem:[#allocation2 + $0x60] sm:$0xff]  ;;  %v1223_v37 = vpop.permute.xlu2 %1222 }
 0x22f   : > { %947 = vst.msk [vmem:[#allocation2 + $0xa8] sm:$0xff] %vm939_vm14, %v930_v23 }
 0x230   : > { %996 = vst.msk [vmem:[#allocation2 + $0xa8] sm:$0xff] %vm988_vm0, %v979_v21 }
 0x235   : > { %v1270_v25 = vpop.permute.xlu1 %1269 }
 0x236   : > { %1289 = vst.msk [vmem:[#allocation2 + $0x78] sm:$0xff] %vm1283_vm11, %v1270_v25  ;;  %v1026_v27 = vpop.permute.xlu0 %1025  ;;  %v1274_v41 = vpop.permute.xlu2 %1273 }
 0x237   : > { %1044 = vst.msk [vmem:[#allocation2 + $0x90] sm:$0xff] %vm1037_vm5, %v1026_v27 }
 0x238   : > { %1093 = vst.msk [vmem:[#allocation2 + $0x90] sm:$0xff] %vm1086_vm6, %v1075_v24 }
 0x23d   : > { %v1124_v29 = vpop.permute.xlu1 %1123  ;;  %v1297_v31 = vld [vmem:[#allocation2 + $0x78] sm:$0xff] }
 0x23e   : > { %1142 = vst.msk [vmem:[#allocation2 + $0x90] sm:$0xff] %vm1135_vm7, %v1124_v29  ;;  %v1302_v32 = vpack.c.bf16 %v1297_v31, %v1296_v30  ;;  %v1077_v33 = vpop.permute.xlu0 %1076 }
 0x240   : > { %2413 = vmatmul.msk.bf16.gmra.mxu2 %vm1342_vm12, %v1302_v32 }
 0x245   : > { %v1028_v36 = vpop.permute.xlu1 %1027 }
 0x246   : > { %1045 = vst.msk [vmem:[#allocation2 + $0xa8] sm:$0xff] %vm1037_vm5, %v1028_v36  ;;  %v1174_v38 = vpop.permute.xlu0 %1173 }
 0x247   : > { %1094 = vst.msk [vmem:[#allocation2 + $0xa8] sm:$0xff] %vm1086_vm6, %v1077_v33  ;;  %vm1622_vm6 = vcmask 785920  }
 0x248   : > { %1143 = vst.msk [vmem:[#allocation2 + $0xa8] sm:$0xff] %vm1135_vm7, %v1126_v28 }
 0x249   : > { %1192 = vst.msk [vmem:[#allocation2 + $0x90] sm:$0xff] %vm1185_vm9, %v1174_v38 }
 0x24a   : > { %1193 = vst.msk [vmem:[#allocation2 + $0xa8] sm:$0xff] %vm1185_vm9, %v2974_v1 }
 0x24b   : > { %1241 = vst.msk [vmem:[#allocation2 + $0x90] sm:$0xff] %vm1234_vm10, %v1223_v37 }
 0x24d   : > { %v1272_v40 = vpop.permute.xlu1 %1271 }
 0x24e   : > { %1290 = vst.msk [vmem:[#allocation2 + $0x90] sm:$0xff] %vm1283_vm11, %v1272_v40  ;;  %v1225_v42 = vpop.permute.xlu0 %1224 }
 0x24f   : > { %1242 = vst.msk [vmem:[#allocation2 + $0xa8] sm:$0xff] %vm1234_vm10, %v1225_v42  ;;  %vm1671_vm10 = vcmask 1048320  }
 0x250   : > { %1291 = vst.msk [vmem:[#allocation2 + $0xa8] sm:$0xff] %vm1283_vm11, %v1274_v41 }
 0x255   : > { %v1298_v1 = vld [vmem:[#allocation2 + $0x90] sm:$0xff]  ;;  %v1550_v9 = vpop.permute.xlu1 %1549 }
 0x256   : > { %1574 = vst.msk [vmem:[#allocation2] sm:$0xff] %vm1573_vm3, %v1550_v9  ;;  %v1599_v17 = vpop.permute.xlu0 %1598 }
 0x257   : > { %v1299_v43 = vld [vmem:[#allocation2 + $0xa8] sm:$0xff]  ;;  %1623 = vst.msk [vmem:[#allocation2] sm:$0xff] %vm1622_vm6, %v1599_v17 }
 0x258   : > { %v1303_v44 = vpack.c.bf16 %v1299_v43, %v1298_v1 }
 0x25a   : > { %2414 = vmatmul.msk.bf16.gmra.mxu2 %vm1342_vm12, %v1303_v44 }
 0x25d   : > { %v3171_v24 = vpop.permute.xlu1 %1775 }
 0x264   : > { %v3169_v23 = vpop.permute.xlu0 %1823 }
 0x26f   : > { %v1368_v51 = vpop.f32.mrf.mxu0 }
 0x270   : > { %v1369_v52 = vadd.f32 %v2557_v49, %v1368_v51 }
 0x272   : > { %v1398_v53 = vmul.f32 %v2558_v50, %v1369_v52  ;;  %vm1389_vm14 = vcmp.gt.f32.partialorder %v1369_v52, 0.0 }
 0x274   : > { %v3138_v45 = vsel %vm1389_vm14, %v1369_v52, %v1398_v53 }
 0x275   : > { %1422 = vrot.lane.b32.xlu0 %v3138_v45, %s2577_s29 }
 0x277   : > { %v1370_v54 = vpop.f32.mrf.mxu0 }
 0x278   : > { %v1371_v55 = vadd.f32 %v2557_v49, %v1370_v54 }
 0x27a   : > { %v1399_v56 = vmul.f32 %v2558_v50, %v1371_v55  ;;  %vm1390_vm0 = vcmp.gt.f32.partialorder %v1371_v55, 0.0 }
 0x27c   : > { %v3142_v57 = vsel %vm1390_vm0, %v1371_v55, %v1399_v56  ;;  %v3221_v56 = vld [vmem:[%s3468_s5 + $0x88] sm:$0xff] }
 0x27d   : > { %1424 = vrot.lane.b32.xlu1 %v3142_v57, %s2577_s29  ;;  %2531 = vmatpush.bf16.msrb.mxu2 %v3221_v56 }
 0x294   : > { %v1373_v58 = vpop.f32.mrf.mxu2 }
 0x295   : > { %v1374_v60 = vadd.f32 %v2557_v49, %v1373_v58 }
 0x297   : > { %v1400_v61 = vmul.f32 %v2558_v50, %v1374_v60  ;;  %vm1391_vm1 = vcmp.gt.f32.partialorder %v1374_v60, 0.0 }
 0x299   : > { %v3146_v0 = vsel %vm1391_vm1, %v1374_v60, %v1400_v61  ;;  %v3231_v60 = vld [vmem:[%s3468_s5 + $0x80] sm:$0xff]  ;;  %v1848_v61 = vld [vmem:[#allocation4 + $0x92] sm:$0xff] }
 0x29a   : > { %1426 = vrot.lane.b32.xlu2 %v3146_v0, %s2577_s29  ;;  %2532 = vmatpush.bf16.msrb.mxu2 %v3231_v60  ;;  %1856 = vst.msk [vmem:[#allocation2 + $0xb8] sm:$0xff] %vm1454_vm13, %v1848_v61 }
 0x29c   : > { %v1375_v3 = vpop.f32.mrf.mxu2 }
 0x29d   : > { %v1376_v4 = vadd.f32 %v2557_v49, %v1375_v3 }
 0x29f   : > { %v1401_v5 = vmul.f32 %v2558_v50, %v1376_v4  ;;  %vm1392_vm2 = vcmp.gt.f32.partialorder %v1376_v4, 0.0 }
 0x2a1   : > { %v3150_v6 = vsel %vm1392_vm2, %v1376_v4, %v1401_v5 }
 0x2a2   : > { %1428 = vrot.lane.b32.xlu0 %v3150_v6, %s2577_s29 }
 0x2c3   : > { %v1378_v10 = vpop.f32.mrf.mxu2 }
 0x2c4   : > { %v1379_v11 = vadd.f32 %v2557_v49, %v1378_v10 }
 0x2c6   : > { %v1402_v13 = vmul.f32 %v2558_v50, %v1379_v11  ;;  %vm1393_vm4 = vcmp.gt.f32.partialorder %v1379_v11, 0.0 }
 0x2c8   : > { %v3156_v59 = vsel %vm1393_vm4, %v1379_v11, %v1402_v13 }
 0x2c9   : > { %1430 = vrot.lane.b32.xlu1 %v3156_v59, %s2577_s29 }
 0x2cb   : > { %v1380_v14 = vpop.f32.mrf.mxu2 }
 0x2cc   : > { %v1381_v63 = vadd.f32 %v2557_v49, %v1380_v14  ;;  %v2514_v14 = vld [vmem:[%s3468_s5 + $0x38] sm:$0xff] }
 0x2cd   : > { %2051 = vmatpush.bf16.msrb.mxu3 %v2514_v14 }
 0x2ce   : > { %v1403_v15 = vmul.f32 %v2558_v50, %v1381_v63  ;;  %vm1394_vm5 = vcmp.gt.f32.partialorder %v1381_v63, 0.0 }
 0x2d0   : > { %v3160_v16 = vsel %vm1394_vm5, %v1381_v63, %v1403_v15 }
 0x2d1   : > { %1432 = vrot.lane.b32.xlu2 %v3160_v16, %s2577_s29 }
 0x2dd   : > { %v1383_v18 = vpop.f32.mrf.mxu2 }
 0x2de   : > { %v1384_v19 = vadd.f32 %v2557_v49, %v1383_v18 }
 0x2e0   : > { %v1404_v21 = vmul.f32 %v2558_v50, %v1384_v19  ;;  %vm1395_vm7 = vcmp.gt.f32.partialorder %v1384_v19, 0.0 }
 0x2e2   : > { %v3165_v22 = vsel %vm1395_vm7, %v1384_v19, %v1404_v21  ;;  %v2513_v19 = vld [vmem:[%s3468_s5 + $0x30] sm:$0xff] }
 0x2e3   : > { %1434 = vrot.lane.b32.xlu0 %v3165_v22, %s2577_s29  ;;  %2052 = vmatpush.bf16.msrb.mxu3 %v2513_v19 }
 0x2e5   : > { %v1385_v25 = vpop.f32.mrf.mxu2 }
 0x2e6   : > { %v1386_v27 = vadd.f32 %v2557_v49, %v1385_v25 }
 0x2e7   : > { %v1423_v30 = vpop.permute.xlu0 %1422 }
 0x2e8   : > { %v1405_v28 = vmul.f32 %v2558_v50, %v1386_v27  ;;  %vm1396_vm9 = vcmp.gt.f32.partialorder %v1386_v27, 0.0  ;;  %v1446_v33 = vsub.f32 %v2887_v2, %v1423_v30  ;;  %v2512_v30 = vld [vmem:[%s3468_s5 + $0x28] sm:$0xff] }
 0x2e9   : > { %2053 = vmatpush.bf16.msrb.mxu3 %v2512_v30 }
 0x2ea   : > { %v3173_v29 = vsel %vm1396_vm9, %v1386_v27, %v1405_v28 }
 0x2eb   : > { %1436 = vrot.lane.b32.xlu1 %v3173_v29, %s2577_s29 }
 0x2ef   : > { %v1425_v31 = vpop.permute.xlu1 %1424 }
 0x2f0   : > { %v1447_v32 = vsub.f32 %v2893_v8, %v1425_v31 }
 0x2f2   : > { %1486 = vrot.lane.b32.xlu2 %v1447_v32, %s2581_s21  ;;  %v2511_v32 = vld [vmem:[%s3468_s5 + $0x20] sm:$0xff] }
 0x2f3   : > { %1484 = vrot.lane.b32.xlu1 %v1446_v33, %s2581_s21  ;;  %2054 = vmatpush.bf16.msrb.mxu3 %v2511_v32 }
 0x2f4   : > { %v1427_v34 = vpop.permute.xlu2 %1426 }
 0x2f5   : > { %v1448_v35 = vsub.f32 %v2912_v20, %v1427_v34  ;;  %v2510_v34 = vld [vmem:[%s3468_s5 + $0x18] sm:$0xff] }
 0x2f7   : > { %1488 = vrot.lane.b32.xlu0 %v1448_v35, %s2581_s21  ;;  %v2522_v35 = vld [vmem:[%s3468_s5 + $0x78] sm:$0xff]  ;;  %2055 = vmatpush.bf16.msrb.mxu3 %v2510_v34 }
 0x2f8   : > { %2080 = vmatpush.bf16.msrb.mxu1 %v2522_v35 }
 0x314   : > { %v1429_v36 = vpop.permute.xlu0 %1428 }
 0x315   : > { %v1449_v37 = vsub.f32 %v2920_v26, %v1429_v36 }
 0x317   : > { %1490 = vrot.lane.b32.xlu2 %v1449_v37, %s2581_s21  ;;  %v2509_v37 = vld [vmem:[%s3468_s5 + $0x10] sm:$0xff] }
 0x318   : > { %2056 = vmatpush.bf16.msrb.mxu3 %v2509_v37 }
 0x32b   : > { %v1433_v38 = vpop.permute.xlu2 %1432 }
 0x32c   : > { %v1451_v40 = vsub.f32 %v2950_v48, %v1433_v38  ;;  %v2521_v38 = vld [vmem:[%s3468_s5 + $0x70] sm:$0xff] }
 0x32d   : > { %2081 = vmatpush.bf16.msrb.mxu1 %v2521_v38 }
 0x32e   : > { %1494 = vrot.lane.b32.xlu1 %v1451_v40, %s2581_s21 }
 0x33b   : > { %v1431_v41 = vpop.permute.xlu1 %1430 }
 0x33c   : > { %v1450_v8 = vsub.f32 %v2940_v39, %v1431_v41 }
 0x33e   : > { %1492 = vrot.lane.b32.xlu0 %v1450_v8, %s2581_s21 }
 0x34c   : > { %v1487_v2 = vpop.permute.xlu2 %1486 }
 0x34d   : > { %1510 = vst.msk [vmem:[#allocation4 + $0x21] sm:$0xff] %vm1454_vm13, %v1487_v2  ;;  %v2508_v2 = vld [vmem:[%s3468_s5 + $0x8] sm:$0xff] }
 0x34e   : > { %2057 = vmatpush.bf16.msrb.mxu3 %v2508_v2 }
 0x354   : > { %v1841_v42 = vld [vmem:[#allocation4 + $0x22] sm:$0xff] }
 0x355   : > { %v1745_v1 = vld [vmem:[#allocation4 + $0x20] sm:$0xff]  ;;  %1849 = vst.msk [vmem:[#allocation2 + $0x10] sm:$0xff] %vm1454_vm13, %v1841_v42  ;;  %v1435_v20 = vpop.permute.xlu0 %1434 }
 0x356   : > { %v1535_v43 = vld [vmem:[#allocation4 + $0x21] sm:$0xff]  ;;  %v1452_v26 = vsub.f32 %v2970_v62, %v1435_v20  ;;  %1527 = vst.msk [vmem:[#allocation2 + $0x30] sm:$0xff] %vm1454_vm13, %v1745_v1 }
 0x357   : > { %1689 = vst.msk [vmem:[#allocation2 + $0x20] sm:$0xff] %vm1454_vm13, %v1535_v43 }
 0x358   : > { %1496 = vrot.lane.b32.xlu2 %v1452_v26, %s2581_s21  ;;  %v2518_v26 = vld [vmem:[%s3468_s5 + $0x58] sm:$0xff] }
 0x35d   : > { %v1437_v48 = vpop.permute.xlu1 %1436 }
 0x35e   : > { %v1453_v39 = vsub.f32 %v2985_v12, %v1437_v48 }
 0x360   : > { %1498 = vrot.lane.b32.xlu2 %v1453_v39, %s2581_s21  ;;  %v1880_v39 = vld [vmem:[#allocation2 + $0xb8] sm:$0xff] }
 0x365   : > { %v1485_v44 = vpop.permute.xlu1 %1484 }
 0x366   : > { %1509 = vst.msk [vmem:[#allocation4 + $0x11] sm:$0xff] %vm1454_vm13, %v1485_v44  ;;  %v2517_v44 = vld [vmem:[%s3468_s5 + $0x50] sm:$0xff] }
 0x369   : > { %v1489_v46 = vpop.permute.xlu0 %1488 }
 0x36a   : > { %1511 = vst.msk [vmem:[#allocation4 + $0x31] sm:$0xff] %vm1454_vm13, %v1489_v46 }
 0x36d   : > { %v1696_v47 = vld [vmem:[#allocation4 + $0x12] sm:$0xff] }
 0x36e   : > { %v1534_v49 = vld [vmem:[#allocation4 + $0x11] sm:$0xff]  ;;  %1712 = vrot.lane.b32.xlu0 %v1696_v47, %s2569_s30  ;;  %1600 = vrot.lane.b32.xlu1 %v1696_v47, %s2572_s10 }
 0x36f   : > { %v1631_v50 = vld [vmem:[#allocation4 + $0x10] sm:$0xff]  ;;  %1551 = vrot.lane.b32.xlu2 %v1534_v49, %s2569_s30  ;;  %1688 = vst.msk [vmem:[#allocation2 + $0x8] sm:$0xff] %vm1454_vm13, %v1534_v49 }
 0x370   : > { %1526 = vst.msk [vmem:[#allocation2 + $0x18] sm:$0xff] %vm1454_vm13, %v1631_v50 }
 0x371   : > { %v1842_v62 = vld [vmem:[#allocation4 + $0x32] sm:$0xff]  ;;  %v1491_v12 = vpop.permute.xlu2 %1490 }
 0x372   : > { %v1746_v51 = vld [vmem:[#allocation4 + $0x30] sm:$0xff]  ;;  %1850 = vst.msk [vmem:[#allocation2 + $0x28] sm:$0xff] %vm1454_vm13, %v1842_v62 }
 0x373   : > { %v1536_v52 = vld [vmem:[#allocation4 + $0x31] sm:$0xff]  ;;  %1512 = vst.msk [vmem:[#allocation4 + $0x41] sm:$0xff] %vm1454_vm13, %v1491_v12  ;;  %v2516_v12 = vld [vmem:[%s3468_s5 + $0x48] sm:$0xff] }
 0x374   : > { %1528 = vst.msk [vmem:[#allocation2 + $0x48] sm:$0xff] %vm1454_vm13, %v1746_v51 }
 0x375   : > { %1690 = vst.msk [vmem:[#allocation2 + $0x38] sm:$0xff] %vm1454_vm13, %v1536_v52 }
 0x376   : > { %1761 = vrot.lane.b32.xlu0 %v1745_v1, %s2572_s10  ;;  %1714 = vrot.lane.b32.xlu1 %v1841_v42, %s2569_s30 }
 0x377   : > { %1647 = vrot.lane.b32.xlu2 %v1631_v50, %s2574_s12 }
 0x37a   : > { %v1843_v53 = vld [vmem:[#allocation4 + $0x42] sm:$0xff] }
 0x37b   : > { %v1747_v54 = vld [vmem:[#allocation4 + $0x40] sm:$0xff]  ;;  %1851 = vst.msk [vmem:[#allocation2 + $0x40] sm:$0xff] %vm1454_vm13, %v1843_v53 }
 0x37c   : > { %v1537_v55 = vld [vmem:[#allocation4 + $0x41] sm:$0xff]  ;;  %1529 = vst.msk [vmem:[#allocation2 + $0x60] sm:$0xff] %vm1454_vm13, %v1747_v54 }
 0x37d   : > { %1691 = vst.msk [vmem:[#allocation2 + $0x50] sm:$0xff] %vm1454_vm13, %v1537_v55 }
 0x37e   : > { %1649 = vrot.lane.b32.xlu0 %v1745_v1, %s2574_s12  ;;  %1553 = vrot.lane.b32.xlu1 %v1535_v43, %s2569_s30  ;;  %v2507_v1 = vld [vmem:[%s3468_s5] sm:$0xff] }
 0x37f   : > { %1809 = vrot.lane.b32.xlu2 %v1535_v43, %s2574_s12  ;;  %v2519_v43 = vld [vmem:[%s3468_s5 + $0x60] sm:$0xff]  ;;  %2058 = vmatpush.bf16.msrb.mxu3 %v2507_v1 }
 0x382   : > { %v1865_v21 = vld [vmem:[#allocation2 + $0x40] sm:$0xff] }
 0x386   : > { %1602 = vrot.lane.b32.xlu0 %v1841_v42, %s2572_s10  ;;  %1763 = vrot.lane.b32.xlu1 %v1746_v51, %s2572_s10  ;;  %v2520_v42 = vld [vmem:[%s3468_s5 + $0x68] sm:$0xff] }
 0x387   : > { %1555 = vrot.lane.b32.xlu2 %v1536_v52, %s2569_s30  ;;  %2082 = vmatpush.bf16.msrb.mxu1 %v2520_v42 }
 0x38b   : > { %2083 = vmatpush.bf16.msrb.mxu1 %v2519_v43 }
 0x38e   : > { %1811 = vrot.lane.b32.xlu0 %v1536_v52, %s2574_s12  ;;  %1716 = vrot.lane.b32.xlu1 %v1842_v62, %s2569_s30 }
 0x38f   : > { %1651 = vrot.lane.b32.xlu2 %v1746_v51, %s2574_s12  ;;  %2084 = vmatpush.bf16.msrb.mxu1 %v2518_v26  ;;  %v2515_v51 = vld [vmem:[%s3468_s5 + $0x40] sm:$0xff] }
 0x393   : > { %2085 = vmatpush.bf16.msrb.mxu1 %v2517_v44 }
 0x396   : > { %1765 = vrot.lane.b32.xlu0 %v1747_v54, %s2572_s10  ;;  %1604 = vrot.lane.b32.xlu1 %v1842_v62, %s2572_s10 }
 0x397   : > { %1718 = vrot.lane.b32.xlu2 %v1843_v53, %s2569_s30  ;;  %2086 = vmatpush.bf16.msrb.mxu1 %v2516_v12 }
 0x39b   : > { %2087 = vmatpush.bf16.msrb.mxu1 %v2515_v51 }
 0x39e   : > { %1653 = vrot.lane.b32.xlu0 %v1747_v54, %s2574_s12  ;;  %1557 = vrot.lane.b32.xlu1 %v1537_v55, %s2569_s30 }
 0x39f   : > { %1813 = vrot.lane.b32.xlu2 %v1537_v55, %s2574_s12  ;;  %2115 = vmatpush.bf16.msra.mxu1 %v3221_v56 }
 0x3a0   : > { %v1495_v58 = vpop.permute.xlu1 %1494 }
 0x3a1   : > { %1514 = vst.msk [vmem:[#allocation4 + $0x61] sm:$0xff] %vm1454_vm13, %v1495_v58 }
 0x3a3   : > { %2116 = vmatpush.bf16.msra.mxu1 %v3231_v60 }
 0x3a6   : > { %1606 = vrot.lane.b32.xlu0 %v1843_v53, %s2572_s10 }
 0x3a8   : > { %v3236_v3 = vld [vmem:[#allocation4 + $0x62] sm:$0xff] }
 0x3a9   : > { %v1749_v4 = vld [vmem:[#allocation4 + $0x60] sm:$0xff]  ;;  %1853 = vst.msk [vmem:[#allocation2 + $0x70] sm:$0xff] %vm1454_vm13, %v3236_v3 }
 0x3aa   : > { %v3238_v5 = vld [vmem:[#allocation4 + $0x61] sm:$0xff]  ;;  %1531 = vst.msk [vmem:[#allocation2 + $0x90] sm:$0xff] %vm1454_vm13, %v1749_v4 }
 0x3ab   : > { %1693 = vst.msk [vmem:[#allocation2 + $0x80] sm:$0xff] %vm1454_vm13, %v3238_v5 }
 0x3b0   : > { %v1493_v7 = vpop.permute.xlu0 %1492  ;;  %v1871_v40 = vld [vmem:[#allocation2 + $0x70] sm:$0xff] }
 0x3b1   : > { %1513 = vst.msk [vmem:[#allocation4 + $0x51] sm:$0xff] %vm1454_vm13, %v1493_v7 }
 0x3b2   : > { %v1497_v9 = vpop.permute.xlu2 %1496 }
 0x3b3   : > { %1515 = vst.msk [vmem:[#allocation4 + $0x71] sm:$0xff] %vm1454_vm13, %v1497_v9 }
 0x3b8   : > { %v1844_v10 = vld [vmem:[#allocation4 + $0x52] sm:$0xff] }
 0x3b9   : > { %v1796_v11 = vld [vmem:[#allocation4 + $0x51] sm:$0xff]  ;;  %1852 = vst.msk [vmem:[#allocation2 + $0x58] sm:$0xff] %vm1454_vm13, %v1844_v10 }
 0x3ba   : > { %v1748_v13 = vld [vmem:[#allocation4 + $0x50] sm:$0xff]  ;;  %1815 = vrot.lane.b32.xlu0 %v1796_v11, %s2574_s12  ;;  %1559 = vrot.lane.b32.xlu2 %v1796_v11, %s2569_s30  ;;  %v1499_v15 = vpop.permute.xlu2 %1498  ;;  %1692 = vst.msk [vmem:[#allocation2 + $0x68] sm:$0xff] %vm1454_vm13, %v1796_v11 }
 0x3bb   : > { %1767 = vrot.lane.b32.xlu1 %v1748_v13, %s2572_s10  ;;  %1530 = vst.msk [vmem:[#allocation2 + $0x78] sm:$0xff] %vm1454_vm13, %v1748_v13  ;;  %v3255_v63 = vld [vmem:[#allocation4 + $0x72] sm:$0xff] }
 0x3bc   : > { %v3257_v17 = vld [vmem:[#allocation4 + $0x70] sm:$0xff]  ;;  %1854 = vst.msk [vmem:[#allocation2 + $0x88] sm:$0xff] %vm1454_vm13, %v3255_v63 }
 0x3bd   : > { %v1798_v18 = vld [vmem:[#allocation4 + $0x71] sm:$0xff]  ;;  %1516 = vst.msk [vmem:[#allocation4 + $0x81] sm:$0xff] %vm1454_vm13, %v1499_v15 }
 0x3be   : > { %1532 = vst.msk [vmem:[#allocation2 + $0xa8] sm:$0xff] %vm1454_vm13, %v3257_v17 }
 0x3bf   : > { %1694 = vst.msk [vmem:[#allocation2 + $0x98] sm:$0xff] %vm1454_vm13, %v1798_v18 }
 0x3c0   : > { %v1868_v25 = vld [vmem:[#allocation2 + $0x58] sm:$0xff] }
 0x3c1   : > { %v1886_v27 = vpack.c.bf16 %v1868_v25, %v1865_v21 }
 0x3c2   : > { %1769 = vrot.lane.b32.xlu0 %v1749_v4, %s2572_s10  ;;  %1655 = vrot.lane.b32.xlu2 %v1748_v13, %s2574_s12 }
 0x3c3   : > { %1720 = vrot.lane.b32.xlu1 %v1844_v10, %s2569_s30  ;;  %2488 = vmatmul.msk.bf16.vlgmr.msrb.gmra.mxu2 %vm1454_vm13, %v1886_v27  ;;  %v1874_v36 = vld [vmem:[#allocation2 + $0x88] sm:$0xff] }
 0x3c4   : > { %v1847_v28 = vld [vmem:[#allocation4 + $0x82] sm:$0xff]  ;;  %v1889_v41 = vpack.c.bf16 %v1874_v36, %v1871_v40 }
 0x3c5   : > { %1855 = vst.msk [vmem:[#allocation2 + $0xa0] sm:$0xff] %vm1454_vm13, %v1847_v28  ;;  %v3277_v31 = vld [vmem:[#allocation4 + $0x81] sm:$0xff] }
 0x3c6   : > { %1695 = vst.msk [vmem:[#allocation2 + $0xb0] sm:$0xff] %vm1454_vm13, %v3277_v31  ;;  %v1751_v46 = vld [vmem:[#allocation4 + $0x80] sm:$0xff] }
 0x3c9   : > { %v1552_v33 = vpop.permute.xlu2 %1551 }
 0x3ca   : > { %1657 = vrot.lane.b32.xlu0 %v1749_v4, %s2574_s12  ;;  %1722 = vrot.lane.b32.xlu2 %v3236_v3, %s2569_s30  ;;  %1575 = vst.msk [vmem:[#allocation2 + $0x18] sm:$0xff] %vm1573_vm3, %v1552_v33 }
 0x3cb   : > { %1608 = vrot.lane.b32.xlu1 %v1844_v10, %s2572_s10 }
 0x3cc   : > { %v1877_v48 = vld [vmem:[#allocation2 + $0xa0] sm:$0xff] }
 0x3cd   : > { %v1892_v50 = vpack.c.bf16 %v1880_v39, %v1877_v48 }
 0x3d1   : > { %v1648_v8 = vpop.permute.xlu2 %1647 }
 0x3d2   : > { %1819 = vrot.lane.b32.xlu0 %v1798_v18, %s2574_s12  ;;  %1817 = vrot.lane.b32.xlu2 %v3238_v5, %s2574_s12  ;;  %1672 = vst.msk [vmem:[#allocation2] sm:$0xff] %vm1671_vm10, %v1648_v8 }
 0x3d3   : > { %1771 = vrot.lane.b32.xlu1 %v3257_v17, %s2572_s10  ;;  %2489 = vmatmul.msk.bf16.gmra.mxu2 %vm1454_vm13, %v1889_v41 }
 0x3d9   : > { %v1810_v20 = vpop.permute.xlu2 %1809  ;;  %v1857_v56 = vld [vmem:[#allocation2] sm:$0xff] }
 0x3da   : > { %1610 = vrot.lane.b32.xlu0 %v3236_v3, %s2572_s10  ;;  %1563 = vrot.lane.b32.xlu2 %v1798_v18, %s2569_s30 }
 0x3db   : > { %1561 = vrot.lane.b32.xlu1 %v3238_v5, %s2569_s30 }
 0x3e0   : > { %v1601_v47 = vpop.permute.xlu1 %1600  ;;  %v1713_v49 = vpop.permute.xlu0 %1712 }
 0x3e1   : > { %1624 = vst.msk [vmem:[#allocation2 + $0x18] sm:$0xff] %vm1622_vm6, %v1601_v47  ;;  %v1556_v62 = vpop.permute.xlu2 %1555 }
 0x3e2   : > { %1773 = vrot.lane.b32.xlu0 %v1751_v46, %s2572_s10  ;;  %1726 = vrot.lane.b32.xlu2 %v1847_v28, %s2569_s30  ;;  %1577 = vst.msk [vmem:[#allocation2 + $0x48] sm:$0xff] %vm1573_vm3, %v1556_v62 }
 0x3e3   : > { %1724 = vrot.lane.b32.xlu1 %v3255_v63, %s2569_s30  ;;  %2490 = vmatmul.msk.bf16.gmra.mxu2 %vm1454_vm13, %v1892_v50  ;;  %1736 = vst.msk [vmem:[#allocation2 + $0x8] sm:$0xff] %vm1573_vm3, %v1713_v49 }
 0x3e8   : > { %v1715_v52 = vpop.permute.xlu1 %1714  ;;  %v1762_v53 = vpop.permute.xlu0 %1761 }
 0x3e9   : > { %1737 = vst.msk [vmem:[#allocation2 + $0x20] sm:$0xff] %vm1573_vm3, %v1715_v52  ;;  %v1652_v54 = vpop.permute.xlu2 %1651 }
 0x3ea   : > { %1661 = vrot.lane.b32.xlu0 %v1751_v46, %s2574_s12  ;;  %1821 = vrot.lane.b32.xlu2 %v3277_v31, %s2574_s12  ;;  %1785 = vst.msk [vmem:[#allocation2 + $0x8] sm:$0xff] %vm1622_vm6, %v1762_v53 }
 0x3eb   : > { %1612 = vrot.lane.b32.xlu1 %v3255_v63, %s2572_s10  ;;  %1833 = vst.msk [vmem:[#allocation2 + $0x8] sm:$0xff] %vm1671_vm10, %v1810_v20 }
 0x3f0   : > { %v1554_v55 = vpop.permute.xlu1 %1553  ;;  %v1650_v58 = vpop.permute.xlu0 %1649 }
 0x3f1   : > { %1576 = vst.msk [vmem:[#allocation2 + $0x30] sm:$0xff] %vm1573_vm3, %v1554_v55  ;;  %v1719_v61 = vpop.permute.xlu2 %1718 }
 0x3f2   : > { %1659 = vrot.lane.b32.xlu2 %v3257_v17, %s2574_s12  ;;  %1739 = vst.msk [vmem:[#allocation2 + $0x50] sm:$0xff] %vm1573_vm3, %v1719_v61  ;;  %v1858_v13 = vld [vmem:[#allocation2 + $0x8] sm:$0xff] }
 0x3f3   : > { %1673 = vst.msk [vmem:[#allocation2 + $0x18] sm:$0xff] %vm1671_vm10, %v1650_v58 }
 0x3f8   : > { %v1764_v3 = vpop.permute.xlu1 %1763  ;;  %v1603_v4 = vpop.permute.xlu0 %1602 }
 0x3f9   : > { %1786 = vst.msk [vmem:[#allocation2 + $0x20] sm:$0xff] %vm1622_vm6, %v1764_v3  ;;  %v1814_v63 = vpop.permute.xlu2 %1813  ;;  %v1862_v3 = vld [vmem:[#allocation2 + $0x28] sm:$0xff] }
 0x3fa   : > { %1625 = vst.msk [vmem:[#allocation2 + $0x30] sm:$0xff] %vm1622_vm6, %v1603_v4  ;;  %v1860_v60 = vld [vmem:[#allocation2 + $0x18] sm:$0xff]  ;;  %v1859_v4 = vld [vmem:[#allocation2 + $0x10] sm:$0xff] }
 0x3fb   : > { %1674 = vst.msk [vmem:[#allocation2 + $0x30] sm:$0xff] %vm1671_vm10, %v1652_v54  ;;  %v1881_v5 = vpack.c.bf16 %v1860_v60, %v1857_v56  ;;  %v1883_v56 = vpack.c.bf16 %v1862_v3, %v1859_v4 }
 0x3fd   : > { %2059 = vmatmul.bf16.vlgmr.msrb.gmra.mxu3 %v1881_v5  ;;  %v3401_v5 = vld [vmem:[%s3469_s6] ss:$0 sm:$0xff] }
 0x400   : > { %v1717_v7 = vpop.permute.xlu1 %1716  ;;  %v1812_v9 = vpop.permute.xlu0 %1811 }
 0x401   : > { %1738 = vst.msk [vmem:[#allocation2 + $0x38] sm:$0xff] %vm1573_vm3, %v1717_v7 }
 0x402   : > { %1834 = vst.msk [vmem:[#allocation2 + $0x20] sm:$0xff] %vm1671_vm10, %v1812_v9  ;;  %v1863_v25 = vld [vmem:[#allocation2 + $0x30] sm:$0xff] }
 0x408   : > { %v1605_v10 = vpop.permute.xlu1 %1604  ;;  %v1766_v11 = vpop.permute.xlu0 %1765 }
 0x409   : > { %1626 = vst.msk [vmem:[#allocation2 + $0x48] sm:$0xff] %vm1622_vm6, %v1605_v10  ;;  %v1861_v14 = vld [vmem:[#allocation2 + $0x20] sm:$0xff] }
 0x40a   : > { %1787 = vst.msk [vmem:[#allocation2 + $0x38] sm:$0xff] %vm1622_vm6, %v1766_v11  ;;  %v1882_v15 = vpack.c.bf16 %v1861_v14, %v1858_v13 }
 0x40b   : > { %1835 = vst.msk [vmem:[#allocation2 + $0x38] sm:$0xff] %vm1671_vm10, %v1814_v63 }
 0x40c   : > { %2088 = vmatmul.bf16.vlgmr.msrb.gmra.mxu1 %v1882_v15 }
 0x410   : > { %v1558_v17 = vpop.permute.xlu1 %1557  ;;  %v1654_v18 = vpop.permute.xlu0 %1653 }
 0x411   : > { %1578 = vst.msk [vmem:[#allocation2 + $0x60] sm:$0xff] %vm1573_vm3, %v1558_v17 }
 0x412   : > { %1675 = vst.msk [vmem:[#allocation2 + $0x48] sm:$0xff] %vm1671_vm10, %v1654_v18  ;;  %v1864_v38 = vld [vmem:[#allocation2 + $0x38] sm:$0xff] }
 0x414   : > { %v1560_v19 = vpop.permute.xlu2 %1559 }
 0x415   : > { %1579 = vst.msk [vmem:[#allocation2 + $0x78] sm:$0xff] %vm1573_vm3, %v1560_v19 }
 0x418   : > { %v1607_v21 = vpop.permute.xlu0 %1606 }
 0x419   : > { %1627 = vst.msk [vmem:[#allocation2 + $0x60] sm:$0xff] %vm1622_vm6, %v1607_v21  ;;  %v1866_v27 = vld [vmem:[#allocation2 + $0x48] sm:$0xff] }
 0x41a   : > { %v1884_v28 = vpack.c.bf16 %v1866_v27, %v1863_v25  ;;  %v3409_v25 = vld [vmem:[%s3469_s6 + $0x1] ss:$0 sm:$0xff] }
 0x41c   : > { %v1656_v30 = vpop.permute.xlu2 %1655  ;;  %2064 = vmatmul.bf16.gmra.mxu3 %v1884_v28 }
 0x41d   : > { %1676 = vst.msk [vmem:[#allocation2 + $0x60] sm:$0xff] %vm1671_vm10, %v1656_v30 }
 0x424   : > { %v1723_v31 = vpop.permute.xlu2 %1722  ;;  %v1869_v26 = vld [vmem:[#allocation2 + $0x60] sm:$0xff] }
 0x425   : > { %1741 = vst.msk [vmem:[#allocation2 + $0x80] sm:$0xff] %vm1573_vm3, %v1723_v31 }
 0x42c   : > { %v1816_v33 = vpop.permute.xlu0 %1815  ;;  %v1818_v34 = vpop.permute.xlu2 %1817 }
 0x42d   : > { %v1768_v32 = vpop.permute.xlu1 %1767 }
 0x42e   : > { %1788 = vst.msk [vmem:[#allocation2 + $0x50] sm:$0xff] %vm1622_vm6, %v1768_v32 }
 0x42f   : > { %1836 = vst.msk [vmem:[#allocation2 + $0x50] sm:$0xff] %vm1671_vm10, %v1816_v33 }
 0x434   : > { %v1770_v36 = vpop.permute.xlu0 %1769  ;;  %v1564_v37 = vpop.permute.xlu2 %1563 }
 0x435   : > { %v1721_v35 = vpop.permute.xlu1 %1720  ;;  %1581 = vst.msk [vmem:[#allocation2 + $0xa8] sm:$0xff] %vm1573_vm3, %v1564_v37 }
 0x436   : > { %1740 = vst.msk [vmem:[#allocation2 + $0x68] sm:$0xff] %vm1573_vm3, %v1721_v35  ;;  %v1867_v40 = vld [vmem:[#allocation2 + $0x50] sm:$0xff] }
 0x437   : > { %v1885_v41 = vpack.c.bf16 %v1867_v40, %v1864_v38  ;;  %1789 = vst.msk [vmem:[#allocation2 + $0x68] sm:$0xff] %vm1622_vm6, %v1770_v36 }
 0x438   : > { %1837 = vst.msk [vmem:[#allocation2 + $0x68] sm:$0xff] %vm1671_vm10, %v1818_v34 }
 0x439   : > { %2093 = vmatmul.bf16.gmra.mxu1 %v1885_v41 }
 0x43c   : > { %v1658_v2 = vpop.permute.xlu0 %1657  ;;  %v1727_v42 = vpop.permute.xlu2 %1726 }
 0x43d   : > { %v1609_v8 = vpop.permute.xlu1 %1608  ;;  %1743 = vst.msk [vmem:[#allocation2 + $0xb0] sm:$0xff] %vm1573_vm3, %v1727_v42 }
 0x43e   : > { %1628 = vst.msk [vmem:[#allocation2 + $0x78] sm:$0xff] %vm1622_vm6, %v1609_v8 }
 0x43f   : > { %1792 = vst.msk [vmem:[#allocation2 + $0xb0] sm:$0xff] %vm1622_vm6, %v3171_v24  ;;  %v1870_v24 = vld [vmem:[#allocation2 + $0x68] sm:$0xff] }
 0x440   : > { %1840 = vst.msk [vmem:[#allocation2 + $0xb0] sm:$0xff] %vm1671_vm10, %v3169_v23 }
 0x441   : > { %1677 = vst.msk [vmem:[#allocation2 + $0x78] sm:$0xff] %vm1671_vm10, %v1658_v2 }
 0x444   : > { %v1820_v43 = vpop.permute.xlu0 %1819  ;;  %v1822_v20 = vpop.permute.xlu2 %1821 }
 0x445   : > { %v1772_v1 = vpop.permute.xlu1 %1771 }
 0x446   : > { %1790 = vst.msk [vmem:[#allocation2 + $0x80] sm:$0xff] %vm1622_vm6, %v1772_v1  ;;  %v2123_v18 = vpop.f32.mrf.mxu2 }
 0x447   : > { %1838 = vst.msk [vmem:[#allocation2 + $0x80] sm:$0xff] %vm1671_vm10, %v1820_v43  ;;  %v1879_v53 = vld [vmem:[#allocation2 + $0xb0] sm:$0xff] }
 0x448   : > { %v1872_v48 = vld [vmem:[#allocation2 + $0x78] sm:$0xff] }
 0x449   : > { %v1887_v39 = vpack.c.bf16 %v1872_v48, %v1869_v26 }
 0x44b   : > { %2069 = vmatmul.bf16.gmra.mxu3 %v1887_v39 }
 0x44c   : > { %v1611_v46 = vpop.permute.xlu0 %1610  ;;  %v1660_v23 = vpop.permute.xlu2 %1659 }
 0x44d   : > { %v1562_v44 = vpop.permute.xlu1 %1561 }
 0x44e   : > { %1580 = vst.msk [vmem:[#allocation2 + $0x90] sm:$0xff] %vm1573_vm3, %v1562_v44  ;;  %v1873_v47 = vld [vmem:[#allocation2 + $0x80] sm:$0xff]  ;;  %v2125_v35 = vpop.f32.mrf.mxu2 }
 0x44f   : > { %1629 = vst.msk [vmem:[#allocation2 + $0x90] sm:$0xff] %vm1622_vm6, %v1611_v46  ;;  %v1888_v49 = vpack.c.bf16 %v1873_v47, %v1870_v24 }
 0x450   : > { %1678 = vst.msk [vmem:[#allocation2 + $0x90] sm:$0xff] %vm1671_vm10, %v1660_v23 }
 0x451   : > { %2098 = vmatmul.bf16.gmra.mxu1 %v1888_v49 }
 0x454   : > { %v1774_v62 = vpop.permute.xlu0 %1773 }
 0x455   : > { %v1725_v50 = vpop.permute.xlu1 %1724 }
 0x456   : > { %1742 = vst.msk [vmem:[#allocation2 + $0x98] sm:$0xff] %vm1573_vm3, %v1725_v50  ;;  %v2128_v2 = vpop.f32.mrf.mxu2 }
 0x457   : > { %1791 = vst.msk [vmem:[#allocation2 + $0x98] sm:$0xff] %vm1622_vm6, %v1774_v62  ;;  %v1875_v55 = vld [vmem:[#allocation2 + $0x90] sm:$0xff] }
 0x458   : > { %1839 = vst.msk [vmem:[#allocation2 + $0x98] sm:$0xff] %vm1671_vm10, %v1822_v20 }
 0x45c   : > { %v1662_v51 = vpop.permute.xlu0 %1661 }
 0x45d   : > { %v1613_v12 = vpop.permute.xlu1 %1612 }
 0x45e   : > { %1630 = vst.msk [vmem:[#allocation2 + $0xa8] sm:$0xff] %vm1622_vm6, %v1613_v12  ;;  %v2130_v46 = vpop.f32.mrf.mxu2 }
 0x45f   : > { %1679 = vst.msk [vmem:[#allocation2 + $0xa8] sm:$0xff] %vm1671_vm10, %v1662_v51  ;;  %v1876_v52 = vld [vmem:[#allocation2 + $0x98] sm:$0xff] }
 0x460   : > { %v1891_v54 = vpack.c.bf16 %v1879_v53, %v1876_v52 }
 0x462   : > { %2103 = vmatmul.bf16.gmra.mxu1 %v1891_v54 }
 0x466   : > { %v1878_v58 = vld [vmem:[#allocation2 + $0xa8] sm:$0xff]  ;;  %v2133_v54 = vpop.f32.mrf.mxu2 }
 0x467   : > { %v1890_v61 = vpack.c.bf16 %v1878_v58, %v1875_v55 }
 0x469   : > { %2074 = vmatmul.bf16.gmra.mxu3 %v1890_v61 }
 0x472   : > { %2487 = vmatmul.msk.bf16.vlgmr.msra.gmra.mxu1 %vm1454_vm13, %v1883_v56 }
 0x480   : > { %v2060_v60 = vpop.f32.mrf.mxu3 }
 0x481   : > { %v2061_v7 = vadd.f32 %v3401_v5, %v2060_v60 }
 0x488   : > { %v2062_v11 = vpop.f32.mrf.mxu3 }
 0x489   : > { %v2089_v9 = vpop.f32.mrf.mxu1  ;;  %v2063_v13 = vadd.f32 %v3401_v5, %v2062_v11  ;;  %v2135_v11 = vpop.f32.mrf.mxu2 }
 0x48a   : > { %v2090_v10 = vadd.f32 %v2089_v9, %v2061_v7 }
 0x491   : > { %v2091_v14 = vpop.f32.mrf.mxu1 }
 0x492   : > { %v2092_v63 = vadd.f32 %v2091_v14, %v2063_v13 }
 0x49f   : > { %v2065_v15 = vpop.f32.mrf.mxu3 }
 0x4a0   : > { %v2066_v17 = vadd.f32 %v3401_v5, %v2065_v15 }
 0x4a7   : > { %v2067_v28 = vpop.f32.mrf.mxu3 }
 0x4a8   : > { %v2068_v31 = vadd.f32 %v3401_v5, %v2067_v28 }
 0x4b6   : > { %v2094_v19 = vpop.f32.mrf.mxu1 }
 0x4b7   : > { %v2095_v21 = vadd.f32 %v2094_v19, %v2066_v17 }
 0x4b9   : > { %v2124_v27 = vadd.f32 %v2123_v18, %v2095_v21 }
 0x4bb   : > { %v2150_v30 = vmul.f32 %v3409_v25, %v2124_v27  ;;  %vm2141_vm11 = vcmp.gt.f32.partialorder %v2124_v27, 0.0 }
 0x4bd   : > { %v2158_v32 = vsel %vm2141_vm11, %v2124_v27, %v2150_v30 }
 0x4be   : > { %v2096_v33 = vpop.f32.mrf.mxu1  ;;  %2176 = vrot.lane.b32.xlu0 %v2158_v32, %s2569_s30 }
 0x4bf   : > { %v2097_v34 = vadd.f32 %v2096_v33, %v2068_v31 }
 0x4c1   : > { %v2126_v36 = vadd.f32 %v2125_v35, %v2097_v34 }
 0x4c3   : > { %v2151_v37 = vmul.f32 %v3409_v25, %v2126_v36  ;;  %vm2142_vm12 = vcmp.gt.f32.partialorder %v2126_v36, 0.0 }
 0x4c5   : > { %v2159_v38 = vsel %vm2142_vm12, %v2126_v36, %v2151_v37 }
 0x4c6   : > { %2178 = vrot.lane.b32.xlu1 %v2159_v38, %s2569_s30 }
 0x4ce   : > { %v2099_v40 = vpop.f32.mrf.mxu1  ;;  %v2070_v41 = vpop.f32.mrf.mxu3 }
 0x4cf   : > { %v2071_v8 = vadd.f32 %v3401_v5, %v2070_v41 }
 0x4d1   : > { %v2100_v42 = vadd.f32 %v2099_v40, %v2071_v8 }
 0x4d3   : > { %v2129_v1 = vadd.f32 %v2128_v2, %v2100_v42 }
 0x4d5   : > { %v2152_v43 = vmul.f32 %v3409_v25, %v2129_v1  ;;  %vm2143_vm13 = vcmp.gt.f32.partialorder %v2129_v1, 0.0 }
 0x4d6   : > { %v2101_v20 = vpop.f32.mrf.mxu1  ;;  %v2072_v26 = vpop.f32.mrf.mxu3 }
 0x4d7   : > { %v2073_v48 = vadd.f32 %v3401_v5, %v2072_v26  ;;  %v2160_v39 = vsel %vm2143_vm13, %v2129_v1, %v2152_v43 }
 0x4d8   : > { %2180 = vrot.lane.b32.xlu2 %v2160_v39, %s2569_s30 }
 0x4d9   : > { %v2102_v44 = vadd.f32 %v2101_v20, %v2073_v48 }
 0x4db   : > { %v2131_v24 = vadd.f32 %v2130_v46, %v2102_v44 }
 0x4dd   : > { %v2153_v47 = vmul.f32 %v3409_v25, %v2131_v24  ;;  %vm2144_vm15 = vcmp.gt.f32.partialorder %v2131_v24, 0.0 }
 0x4df   : > { %v2104_v23 = vpop.f32.mrf.mxu1  ;;  %v2161_v49 = vsel %vm2144_vm15, %v2131_v24, %v2153_v47 }
 0x4e0   : > { %2182 = vrot.lane.b32.xlu0 %v2161_v49, %s2569_s30 }
 0x4e7   : > { %v2106_v50 = vpop.f32.mrf.mxu1 }
 0x4ec   : > { %v2075_v62 = vpop.f32.mrf.mxu3 }
 0x4ed   : > { %v2076_v12 = vadd.f32 %v3401_v5, %v2075_v62 }
 0x4ef   : > { %v2118_v51 = vpop.f32.mrf.mxu1  ;;  %v2105_v52 = vadd.f32 %v2104_v23, %v2076_v12 }
 0x4f0   : > { %v2119_v53 = vadd.f32 %v2118_v51, %v2090_v10 }
 0x4f1   : > { %v2134_v58 = vadd.f32 %v2133_v54, %v2105_v52 }
 0x4f2   : > { %vm2139_vm14 = vcmp.gt.f32.partialorder %v2119_v53, 0.0  ;;  %v2148_v55 = vmul.f32 %v3409_v25, %v2119_v53 }
 0x4f3   : > { %v2154_v9 = vmul.f32 %v3409_v25, %v2134_v58  ;;  %vm2145_vm0 = vcmp.gt.f32.partialorder %v2134_v58, 0.0 }
 0x4f4   : > { %v2077_v61 = vpop.f32.mrf.mxu3  ;;  %v2156_v3 = vsel %vm2139_vm14, %v2119_v53, %v2148_v55 }
 0x4f5   : > { %v2078_v4 = vadd.f32 %v3401_v5, %v2077_v61  ;;  %2172 = vrot.lane.b32.xlu1 %v2156_v3, %s2569_s30  ;;  %v2162_v15 = vsel %vm2145_vm0, %v2134_v58, %v2154_v9 }
 0x4f7   : > { %v2120_v56 = vpop.f32.mrf.mxu1  ;;  %v2107_v60 = vadd.f32 %v2106_v50, %v2078_v4 }
 0x4f8   : > { %v2121_v7 = vadd.f32 %v2120_v56, %v2092_v63 }
 0x4f9   : > { %v2136_v13 = vadd.f32 %v2135_v11, %v2107_v60 }
 0x4fa   : > { %vm2140_vm1 = vcmp.gt.f32.partialorder %v2121_v7, 0.0  ;;  %v2149_v10 = vmul.f32 %v3409_v25, %v2121_v7 }
 0x4fb   : > { %v2155_v5 = vmul.f32 %v3409_v25, %v2136_v13  ;;  %vm2146_vm2 = vcmp.gt.f32.partialorder %v2136_v13, 0.0 }
 0x4fc   : > { %v2157_v14 = vsel %vm2140_vm1, %v2121_v7, %v2149_v10 }
 0x4fd   : > { %2174 = vrot.lane.b32.xlu2 %v2157_v14, %s2569_s30  ;;  %2184 = vrot.lane.b32.xlu1 %v2162_v15, %s2569_s30  ;;  %v2163_v17 = vsel %vm2146_vm2, %v2136_v13, %v2155_v5 }
 0x505   : > { %2186 = vrot.lane.b32.xlu2 %v2163_v17, %s2569_s30  ;;  %s2493_s30 = sshll.u32 %s3472_s25, 6 }
 0x506   : > { %s278_s28 = scalar_lea.vmem %s3470_s7, %s2493_s30 }
 0x530   : > { %v2177_v63 = vpop.permute.xlu0 %2176 }
 0x531   : > { %v2198_v18 = vadd.f32 %v2177_v63, %v3146_v0 }
 0x532   : > { %v2181_v19 = vpop.permute.xlu2 %2180 }
 0x533   : > { %2216 = vrot.lane.b32.xlu2 %v2198_v18, %s2574_s12  ;;  %v2200_v21 = vadd.f32 %v2181_v19, %v3156_v59 }
 0x535   : > { %2220 = vrot.lane.b32.xlu1 %v2200_v21, %s2574_s12 }
 0x538   : > { %v2179_v27 = vpop.permute.xlu1 %2178 }
 0x539   : > { %v2199_v28 = vadd.f32 %v2179_v27, %v3150_v6 }
 0x53b   : > { %2218 = vrot.lane.b32.xlu0 %v2199_v28, %s2574_s12 }
 0x552   : > { %v2183_v25 = vpop.permute.xlu0 %2182 }
 0x553   : > { %v2201_v30 = vadd.f32 %v2183_v25, %v3160_v16 }
 0x555   : > { %2222 = vrot.lane.b32.xlu2 %v2201_v30, %s2574_s12 }
 0x557   : > { %v2175_v31 = vpop.permute.xlu2 %2174 }
 0x558   : > { %v2197_v0 = vadd.f32 %v2175_v31, %v3142_v57 }
 0x55a   : > { %2214 = vrot.lane.b32.xlu1 %v2197_v0, %s2574_s12 }
 0x55f   : > { %v2187_v32 = vpop.permute.xlu2 %2186 }
 0x560   : > { %v2203_v59 = vadd.f32 %v2187_v32, %v3173_v29 }
 0x562   : > { %2226 = vrot.lane.b32.xlu1 %v2203_v59, %s2574_s12 }
 0x567   : > { %v2173_v33 = vpop.permute.xlu1 %2172 }
 0x568   : > { %v2196_v6 = vadd.f32 %v2173_v33, %v3138_v45 }
 0x56a   : > { %2212 = vrot.lane.b32.xlu0 %v2196_v6, %s2574_s12 }
 0x56f   : > { %v2185_v34 = vpop.permute.xlu1 %2184 }
 0x570   : > { %v2202_v16 = vadd.f32 %v2185_v34, %v3165_v22 }
 0x572   : > { %2224 = vrot.lane.b32.xlu0 %v2202_v16, %s2574_s12 }
 0x58d   : > { %v2217_v57 = vpop.permute.xlu2 %2216 }
 0x58e   : > { %2238 = vst.msk [vmem:[%s278_s28 + $0x10] sm:$0xff] %vm852_vm8, %v2217_v57 }
 0x5a7   : > { %v2221_v29 = vpop.permute.xlu1 %2220 }
 0x5a8   : > { %2240 = vst.msk [vmem:[%s278_s28 + $0x20] sm:$0xff] %vm852_vm8, %v2221_v29 }
 0x5ad   : > { %v2219_v35 = vpop.permute.xlu0 %2218 }
 0x5ae   : > { %2239 = vst.msk [vmem:[%s278_s28 + $0x18] sm:$0xff] %vm852_vm8, %v2219_v35 }
 0x5af   : > { %v2223_v45 = vpop.permute.xlu2 %2222 }
 0x5b0   : > { %2241 = vst.msk [vmem:[%s278_s28 + $0x28] sm:$0xff] %vm852_vm8, %v2223_v45 }
 0x5cc   : > { %v2215_v22 = vpop.permute.xlu1 %2214 }
 0x5cd   : > { %2237 = vst.msk [vmem:[%s278_s28 + $0x8] sm:$0xff] %vm852_vm8, %v2215_v22 }
 0x5d4   : > { %v2227_v36 = vpop.permute.xlu1 %2226 }
 0x5d5   : > { %2243 = vst.msk [vmem:[%s278_s28 + $0x38] sm:$0xff] %vm852_vm8, %v2227_v36 }
 0x5dc   : > { %v2213_v37 = vpop.permute.xlu0 %2212 }
 0x5dd   : > { %2236 = vst.msk [vmem:[%s278_s28] sm:$0xff] %vm852_vm8, %v2213_v37 }
 0x5e4   : > { %v2225_v38 = vpop.permute.xlu0 %2224 }
 0x5e5   : > { %2242 = vst.msk [vmem:[%s278_s28 + $0x30] sm:$0xff] %vm852_vm8, %v2225_v38 }
 0x5e6 PF: > { %s17_s24 = sadd.s32 1, %s2567_s24  }
 0x5e7   : > { %p14_p4 = scmp.ge.s32.totalorder %s17_s24, 4  }
 0x5e9   :  { %16 = sbr.rel (!%p14_p4) target bundleno = 1 (0x1), region = 84 }

</bundles_post_ra>
